<compile_context>
chip_gen: v5e
topology: v5e:2x2
jax: 0.10.0
libtpu: 0.0.40
codegen_flags: <defaults>
</compile_context>

<pallas_src>
import math

import jax
import jax.numpy as jnp
from jax.experimental import pallas as pl
from jax.experimental.pallas import tpu as pltpu


_BUDGET_CACHE = None


def _vmem_budgets():
    """(vmem_limit_bytes, per-step block budget) chosen per TPU generation."""
    global _BUDGET_CACHE
    if _BUDGET_CACHE is not None:
        return _BUDGET_CACHE
    vmem_limit = 40 * 1024 * 1024      # safe for v7x (64 MiB physical VMEM)
    block_budget = 10 * 1024 * 1024
    try:
        cap = int(pltpu.get_tpu_info().vmem_capacity_bytes)
        if cap >= 128 * 1024 * 1024:   # v5e / v6e: plenty of headroom
            vmem_limit, block_budget = 96 * 1024 * 1024, 20 * 1024 * 1024
        elif cap < 64 * 1024 * 1024:
            vmem_limit = min(vmem_limit, cap // 2)
            block_budget = min(block_budget, max(cap // 8, 2 * 1024 * 1024))
    except Exception:
        pass                            # keep conservative defaults
    _BUDGET_CACHE = (vmem_limit, block_budget)
    return _BUDGET_CACHE


def _cdiv(a, b):
    return -(-a // b)


def _round_up(x, m):
    return ((x + m - 1) // m) * m


def _fit_rows(a, rows):
    """Zero-pad / slice `a` along axis 1 to exactly `rows` rows."""
    cur = a.shape[1]
    if cur < rows:
        pad = [(0, 0)] * a.ndim
        pad[1] = (0, rows - cur)
        a = jnp.pad(a, pad)
    elif cur > rows:
        a = a[:, :rows]
    return a


# ---------------------------------------------------------------------------
# Conv kernel (3x3, stride 2, pad 1) on the 2x2-phase (space-to-depth) layout
# ---------------------------------------------------------------------------
def _make_conv_kernel(th, wo_pad, c, cout, use_im2col, compute_dtype):
    def kernel(x00_ref, x01_ref, x10_ref, x11_ref, w_ref, b_ref, o_ref):
        # x00_ref/x01_ref : (1, th+1, w2, c) even padded rows (col phase 0 / 1),
        #                   including one halo row at the bottom of the tile.
        # x10_ref/x11_ref : (1, th,   w2, c) odd padded rows (col phase 0 / 1)
        # w_ref           : (9c, cout)  (kh, kw, cin)-major weight
        # b_ref           : (1, cout)
        # o_ref           : (1, th, wo_pad, cout)
        x00 = x00_ref[0]       # (th+1, w2, c)
        x01 = x01_ref[0]       # (th+1, w2, c)
        x10 = x10_ref[0]       # (th,   w2, c)
        x11 = x11_ref[0]       # (th,   w2, c)

        def tap(src, r0, dw):
            # pure static (sublane / outer-dim) slice: rows r0..r0+th, cols dw..dw+wo_pad
            t = src[r0:r0 + th, dw:dw + wo_pad, :]
            return t.reshape(th * wo_pad, c).astype(compute_dtype)

        # taps ordered (kh, kw) row-major to match the (9c, cout) weight layout
        tap_desc = (
            (x00, 0, 0), (x01, 0, 0), (x00, 0, 1),   # kh = 0 : kw = 0, 1, 2
            (x10, 0, 0), (x11, 0, 0), (x10, 0, 1),   # kh = 1
            (x00, 1, 0), (x01, 1, 0), (x00, 1, 1),   # kh = 2 (halo row included)
        )

        if use_im2col:
            # Small Cin: one big K=9*Cin matmul keeps the MXU occupied.
            patch = jnp.concatenate([tap(s, r0, dw) for (s, r0, dw) in tap_desc],
                                    axis=-1)                       # (th*wo_pad, 9c)
            acc = jnp.dot(patch, w_ref[...].astype(compute_dtype),
                          preferred_element_type=jnp.float32)
        else:
            # Large Cin: 9 taps, accumulated in registers (single store at the end).
            acc = None
            for p, (s, r0, dw) in enumerate(tap_desc):
                w_tap = w_ref[p * c:(p + 1) * c, :].astype(compute_dtype)
                part = jnp.dot(tap(s, r0, dw), w_tap,
                               preferred_element_type=jnp.float32)
                acc = part if acc is None else acc + part

        out = acc + b_ref[...].astype(jnp.float32)
        o_ref[0] = out.reshape(th, wo_pad, cout).astype(o_ref.dtype)

    return kernel


def downsample_conv(x_nchw, w_oihw, bias, *, row_tile=None, use_im2col=None,
                    compute_dtype=None):
    """Downsample with use_conv=True, dims=2: 3x3 conv, stride 2, padding 1."""
    n, c, h, w = x_nchw.shape
    cout = w_oihw.shape[0]
    ho = (h + 2 - 3) // 2 + 1
    wo = (w + 2 - 3) // 2 + 1
    wo_pad = _round_up(wo, 8)            # sublane-aligned output width

    vmem_limit, block_budget = _vmem_budgets()

    if compute_dtype is None:
        # MXU is bf16-native on v5e/v6e/v7x; accumulate in f32.
        compute_dtype = jnp.bfloat16
    if use_im2col is None:
        use_im2col = c < 128             # small Cin: bigger K beats 9 tiny matmuls

    # --- layout: NCHW -> padded channels-last -> four 2x2 phase planes (c lanes
    # each) so every stride-2 tap in the kernel is a contiguous, lane-aligned slice.
    x = jnp.transpose(x_nchw, (0, 2, 3, 1))                  # (n, h, w, c)
    hp_e = _round_up(h + 2, 2)
    w2 = wo_pad + 1
    wp_e = 2 * w2
    xp = jnp.pad(x, ((0, 0), (1, hp_e - h - 1), (1, wp_e - w - 1), (0, 0)))
    h2 = hp_e // 2                                           # = ho + 1
    xs = xp.reshape(n, h2, 2, w2, 2, c)
    x00 = xs[:, :, 0, :, 0, :]                               # even row, even col
    x01 = xs[:, :, 0, :, 1, :]                               # even row, odd col
    x10 = xs[:, :, 1, :, 0, :]                               # odd row, even col
    x11 = xs[:, :, 1, :, 1, :]                               # odd row, odd col

    # --- output-row tiling, accounting for the (possibly double-buffered)
    # grid-invariant weight/bias and in-kernel temporaries, not just per-row data.
    act_is = jnp.dtype(x_nchw.dtype).itemsize
    w_is = jnp.dtype(w_oihw.dtype).itemsize
    cds = jnp.dtype(compute_dtype).itemsize
    fixed = 2 * (9 * c * cout + cout) * w_is                 # weight+bias (worst case 2 bufs)
    fixed += 9 * c * cout * cds                              # in-kernel weight cast copy
    per_row = (4 * 2 * (w2 * c) * act_is                     # 4 phase planes, double buffered
               + 2 * (wo_pad * cout) * act_is                # output block, double buffered
               + wo_pad * 9 * c * cds                        # im2col patch / tap operands
               + wo_pad * cout * 4)                          # f32 accumulator
    if row_tile is None:
        avail = max(block_budget - fixed, per_row)
        row_tile = max(1, avail // per_row)
    th = int(max(1, min(row_tile, ho)))
    if n == 1 and th >= ho and ho > 1:
        th = _cdiv(ho, 2)                # >= 2 grid steps so v7x's 2nd TC gets work
    nt = _cdiv(ho, th)
    th = _cdiv(ho, nt)                   # rebalance so row padding is minimal
    ho_pad = nt * th

    # --- even-row phases: gather th+1 rows per tile (1 duplicated halo row / tile)
    x00 = _fit_rows(x00, ho_pad + 1)
    x01 = _fit_rows(x01, ho_pad + 1)
    x10 = _fit_rows(x10, ho_pad)
    x11 = _fit_rows(x11, ho_pad)
    row_idx = jnp.arange(nt)[:, None] * th + jnp.arange(th + 1)[None, :]  # (nt, th+1)
    x00_t = x00[:, row_idx].reshape(n * nt, th + 1, w2, c)
    x01_t = x01[:, row_idx].reshape(n * nt, th + 1, w2, c)

    # --- weight: OIHW -> (kh, kw, cin)-major rows x Cout columns.
    w9 = jnp.transpose(w_oihw, (2, 3, 1, 0)).reshape(9 * c, cout)
    b2 = bias.reshape(1, cout)

    kernel = _make_conv_kernel(th, wo_pad, c, cout, use_im2col, compute_dtype)

    def call_kernel(single_buffer_invariants):
        if single_buffer_invariants:
            # Grid-invariant operands: no need to double-buffer them in VMEM.
            w_spec = pl.BlockSpec((9 * c, cout), lambda b, t: (0, 0),
                                  pipeline_mode=pl.Buffered(1))
            b_spec = pl.BlockSpec((1, cout), lambda b, t: (0, 0),
                                  pipeline_mode=pl.Buffered(1))
        else:
            w_spec = pl.BlockSpec((9 * c, cout), lambda b, t: (0, 0))
            b_spec = pl.BlockSpec((1, cout), lambda b, t: (0, 0))
        return pl.pallas_call(
            kernel,
            out_shape=jax.ShapeDtypeStruct((n, ho_pad, wo_pad, cout), x_nchw.dtype),
            grid=(n, nt),
            in_specs=[
                pl.BlockSpec((1, th + 1, w2, c),
                             lambda b, t, _nt=nt: (b * _nt + t, 0, 0, 0)),  # x00 (+halo)
                pl.BlockSpec((1, th + 1, w2, c),
                             lambda b, t, _nt=nt: (b * _nt + t, 0, 0, 0)),  # x01 (+halo)
                pl.BlockSpec((1, th, w2, c), lambda b, t: (b, t, 0, 0)),    # x10
                pl.BlockSpec((1, th, w2, c), lambda b, t: (b, t, 0, 0)),    # x11
                w_spec, b_spec,
            ],
            out_specs=pl.BlockSpec((1, th, wo_pad, cout), lambda b, t: (b, t, 0, 0)),
            compiler_params=pltpu.CompilerParams(
                dimension_semantics=("parallel", "parallel"),
                vmem_limit_bytes=vmem_limit),
        )(x00_t, x01_t, x10, x11, w9, b2)

    try:
        out = call_kernel(True)
    except Exception:
        # pipeline_mode=pl.Buffered(1) unsupported on this jax version: fall back to
        # default double-buffered specs (identical results, just less VMEM headroom).
        out = call_kernel(False)

    out = out[:, :ho, :wo]                                   # drop row/col padding
    return jnp.transpose(out, (0, 3, 1, 2))                  # back to NCHW
    # TODO(synk): if the surrounding model runs NHWC, the NCHW<->NHWC relayout
    # passes in this wrapper can be dropped for up to ~2x end-to-end on small Cin.


# ---------------------------------------------------------------------------
# 2x2 average pool (stride 2), natively in NCHW: VPU row-pair sum + small matmul
# ---------------------------------------------------------------------------
def _make_avgpool_kernel(wi, compute_dtype):
    def kernel(x_ref, p_ref, o_ref):
        # x_ref: (1, tr, 2*wi)  row k = [even image row | odd image row] of one channel
        # p_ref: (wi, wo)       constant 0 / 0.25 column-pair selection matrix
        # o_ref: (1, tr, wo)
        xr = x_ref[0]
        s = (xr[:, :wi] + xr[:, wi:]).astype(compute_dtype)   # row-pair sum on the VPU
        o_ref[0] = jnp.dot(s, p_ref[...],
                           preferred_element_type=jnp.float32).astype(o_ref.dtype)
    return kernel


def downsample_avgpool(x_nchw, *, row_tile=None, compute_dtype=None):
    """Downsample with use_conv=False, dims=2: 2x2 average pool, stride 2."""
    n, c, h, w = x_nchw.shape
    ho, wo = h // 2, w // 2
    assert ho >= 1 and wo >= 1, "avg_pool2d(2, 2) needs H, W >= 2"
    vmem_limit, block_budget = _vmem_budgets()
    if compute_dtype is None:
        # Keep f32 so pooled activations are exact; the matmul is already halved.
        compute_dtype = jnp.bfloat16 if x_nchw.dtype == jnp.bfloat16 else jnp.float32

    # Stay in NCHW: below are only *free* reshapes (no HBM transpose passes).
    x = x_nchw[:, :, :2 * ho, :2 * wo]          # torch floors odd H/W
    wi = 2 * wo
    xr = x.reshape(n, c * ho, 2 * wi)           # row = [even image row | odd image row]

    # Column-pair average via one small matmul (MXU does the lane reduction);
    # entries 0.25 fold both 1/2 factors of the 2x2 mean.
    P = ((jnp.arange(wi)[:, None] // 2) == jnp.arange(wo)[None, :])
    P = P.astype(compute_dtype) * jnp.asarray(0.25, compute_dtype)

    rows = c * ho
    act_is = jnp.dtype(x_nchw.dtype).itemsize
    if row_tile is None:
        per_row = 2 * (2 * wi) * act_is + 2 * wo * act_is + (wi + wo) * 4
        row_tile = max(8, min(block_budget // max(per_row, 1), 2048))
    tr = _round_up(min(int(row_tile), rows), 8)  # keep second-minor 8-aligned
    if n == 1 and tr >= rows and rows > 8:
        tr = _round_up(_cdiv(rows, 2), 8)        # >= 2 grid steps for v7x's 2nd TC
    nt = _cdiv(rows, tr)
    rows_pad = nt * tr
    if rows_pad != rows:
        xr = jnp.pad(xr, ((0, 0), (0, rows_pad - rows), (0, 0)))

    # TODO(synk): for wo < 128, pack multiple channels onto lanes (block-diagonal P)
    # to make the output stores lane-dense; not implemented here.
    out = pl.pallas_call(
        _make_avgpool_kernel(wi, compute_dtype),
        out_shape=jax.ShapeDtypeStruct((n, rows_pad, wo), x_nchw.dtype),
        grid=(n, nt),
        in_specs=[
            pl.BlockSpec((1, tr, 2 * wi), lambda b, t: (b, t, 0)),
            pl.BlockSpec((wi, wo), lambda b, t: (0, 0)),
        ],
        out_specs=pl.BlockSpec((1, tr, wo), lambda b, t: (b, t, 0)),
        compiler_params=pltpu.CompilerParams(
            dimension_semantics=("parallel", "parallel"),
            vmem_limit_bytes=vmem_limit),
    )(xr, P)

    return out[:, :rows].reshape(n, c, ho, wo)


# ---------------------------------------------------------------------------
# Module-level forward mirroring Downsample.forward
# ---------------------------------------------------------------------------
def downsample_forward(x, *, use_conv, weight=None, bias=None, dims=2, **kw):
    assert dims == 2  # TODO(synk): dims=1 and dims=3 not implemented
    if use_conv:
        return downsample_conv(x, weight, bias, **kw)
    return downsample_avgpool(x, **kw)


def init_downsample_conv_params(key, channels, out_channels):
    """Deterministic init mirroring nn.Conv2d default (uniform +/- 1/sqrt(fan_in))."""
    k_w, k_b = jax.random.split(key)
    fan_in = channels * 3 * 3
    bound = 1.0 / math.sqrt(fan_in)
    wgt = jax.random.uniform(k_w, (out_channels, channels, 3, 3), jnp.float32,
                             minval=-bound, maxval=bound)
    b = jax.random.uniform(k_b, (out_channels,), jnp.float32,
                           minval=-bound, maxval=bound)
    return wgt, b


# ---------------------------------------------------------------------------
# Demo / correctness check
# ---------------------------------------------------------------------------
if __name__ == "__main__":
    key = jax.random.PRNGKey(0)
    kx, kp = jax.random.split(key)

    n, channels, out_channels, h, w = 2, 4, 4, 16, 16
    x = jax.random.normal(kx, (n, channels, h, w), jnp.float32)     # NCHW like torch
    wgt, b = init_downsample_conv_params(kp, channels, out_channels)

    # use_conv=True: default path (bf16 MXU feed, im2col, auto row tile)
    y_conv = downsample_forward(x, use_conv=True, weight=wgt, bias=b)
    # use_conv=True: multi-row-tile + halo + tap-loop path, exact f32 operands
    y_conv_f32 = downsample_conv(x, wgt, b, row_tile=3, use_im2col=False,
                                 compute_dtype=jnp.float32)
    # use_conv=False: default and explicitly row-tiled pool
    y_pool = downsample_forward(x, use_conv=False)
    y_pool_t = downsample_avgpool(x, row_tile=8)
    jax.block_until_ready((y_conv, y_conv_f32, y_pool, y_pool_t))

    # References (plain XLA) for sanity.
    ref_conv = jax.lax.conv_general_dilated(
        x, wgt, window_strides=(2, 2), padding=((1, 1), (1, 1)),
        dimension_numbers=("NCHW", "OIHW", "NCHW")) + b[None, :, None, None]
    ref_pool = x.reshape(n, channels, h // 2, 2, w // 2, 2).mean(axis=(3, 5))

    assert y_conv.shape == (n, out_channels, h // 2, w // 2)
    assert y_pool.shape == (n, channels, h // 2, w // 2)
    # default path feeds the MXU bf16 operands (f32 accumulation) -> looser tolerance
    assert jnp.allclose(y_conv, ref_conv, atol=3e-2, rtol=3e-2)
    assert jnp.allclose(y_conv_f32, ref_conv, atol=1e-4, rtol=1e-4)
    assert jnp.allclose(y_pool, ref_pool, atol=1e-5, rtol=1e-5)
    assert jnp.allclose(y_pool_t, ref_pool, atol=1e-5, rtol=1e-5)

    print("KERNEL_OK")
</pallas_src>

<mosaic_0001>
module attributes {stable_mosaic.version = 11 : i64} {
  func.func @kernel(%arg0: i32, %arg1: i32, %arg2: memref<1x9x9x4xf32, #tpu.memory_space<vmem>>, %arg3: memref<1x9x9x4xf32, #tpu.memory_space<vmem>>, %arg4: memref<1x8x9x4xf32, #tpu.memory_space<vmem>>, %arg5: memref<1x8x9x4xf32, #tpu.memory_space<vmem>>, %arg6: memref<36x4xf32, #tpu.memory_space<vmem>>, %arg7: memref<1x4xf32, #tpu.memory_space<vmem>>, %arg8: memref<1x8x8x4xf32, #tpu.memory_space<vmem>>) attributes {dimension_semantics = [#tpu.dimension_semantics<parallel>, #tpu.dimension_semantics<parallel>], iteration_bounds = array<i64: 2, 1>, scalar_prefetch = 0 : i64, scratch_operands = 0 : i64, tpu.core_type = #tpu.core_type<tc>, window_params = [{transform_indices = @transform_0, window_bounds = array<i64: 1, 9, 9, 4>}, {transform_indices = @transform_1, window_bounds = array<i64: 1, 9, 9, 4>}, {transform_indices = @transform_2, window_bounds = array<i64: 1, 8, 9, 4>}, {transform_indices = @transform_3, window_bounds = array<i64: 1, 8, 9, 4>}, {pipeline_mode = #tpu.pipeline_mode<synchronous>, transform_indices = @transform_4, window_bounds = array<i64: 36, 4>}, {pipeline_mode = #tpu.pipeline_mode<synchronous>, transform_indices = @transform_5, window_bounds = array<i64: 1, 4>}, {transform_indices = @transform_6, window_bounds = array<i64: 1, 8, 8, 4>}]} {
    %c0 = arith.constant 0 : index
    %c0_0 = arith.constant 0 : index
    %c0_1 = arith.constant 0 : index
    %c0_2 = arith.constant 0 : index
    %0 = vector.load %arg2[%c0, %c0_0, %c0_1, %c0_2] : memref<1x9x9x4xf32, #tpu.memory_space<vmem>>, vector<1x9x9x4xf32>
    %1 = vector.shape_cast %0 : vector<1x9x9x4xf32> to vector<9x9x4xf32>
    %c0_3 = arith.constant 0 : index
    %c0_4 = arith.constant 0 : index
    %c0_5 = arith.constant 0 : index
    %c0_6 = arith.constant 0 : index
    %2 = vector.load %arg3[%c0_3, %c0_4, %c0_5, %c0_6] : memref<1x9x9x4xf32, #tpu.memory_space<vmem>>, vector<1x9x9x4xf32>
    %3 = vector.shape_cast %2 : vector<1x9x9x4xf32> to vector<9x9x4xf32>
    %c0_7 = arith.constant 0 : index
    %c0_8 = arith.constant 0 : index
    %c0_9 = arith.constant 0 : index
    %c0_10 = arith.constant 0 : index
    %4 = vector.load %arg4[%c0_7, %c0_8, %c0_9, %c0_10] : memref<1x8x9x4xf32, #tpu.memory_space<vmem>>, vector<1x8x9x4xf32>
    %5 = vector.shape_cast %4 : vector<1x8x9x4xf32> to vector<8x9x4xf32>
    %c0_11 = arith.constant 0 : index
    %c0_12 = arith.constant 0 : index
    %c0_13 = arith.constant 0 : index
    %c0_14 = arith.constant 0 : index
    %6 = vector.load %arg5[%c0_11, %c0_12, %c0_13, %c0_14] : memref<1x8x9x4xf32, #tpu.memory_space<vmem>>, vector<1x8x9x4xf32>
    %7 = vector.shape_cast %6 : vector<1x8x9x4xf32> to vector<8x9x4xf32>
    %8 = vector.extract_strided_slice %1 {offsets = [0, 0, 0], sizes = [8, 8, 4], strides = [1, 1, 1]} : vector<9x9x4xf32> to vector<8x8x4xf32>
    %9 = vector.shape_cast %8 : vector<8x8x4xf32> to vector<64x4xf32>
    %10 = arith.truncf %9 : vector<64x4xf32> to vector<64x4xbf16>
    %11 = vector.extract_strided_slice %3 {offsets = [0, 0, 0], sizes = [8, 8, 4], strides = [1, 1, 1]} : vector<9x9x4xf32> to vector<8x8x4xf32>
    %12 = vector.shape_cast %11 : vector<8x8x4xf32> to vector<64x4xf32>
    %13 = arith.truncf %12 : vector<64x4xf32> to vector<64x4xbf16>
    %14 = vector.extract_strided_slice %1 {offsets = [0, 1, 0], sizes = [8, 8, 4], strides = [1, 1, 1]} : vector<9x9x4xf32> to vector<8x8x4xf32>
    %15 = vector.shape_cast %14 : vector<8x8x4xf32> to vector<64x4xf32>
    %16 = arith.truncf %15 : vector<64x4xf32> to vector<64x4xbf16>
    %17 = vector.extract_strided_slice %5 {offsets = [0, 0, 0], sizes = [8, 8, 4], strides = [1, 1, 1]} : vector<8x9x4xf32> to vector<8x8x4xf32>
    %18 = vector.shape_cast %17 : vector<8x8x4xf32> to vector<64x4xf32>
    %19 = arith.truncf %18 : vector<64x4xf32> to vector<64x4xbf16>
    %20 = vector.extract_strided_slice %7 {offsets = [0, 0, 0], sizes = [8, 8, 4], strides = [1, 1, 1]} : vector<8x9x4xf32> to vector<8x8x4xf32>
    %21 = vector.shape_cast %20 : vector<8x8x4xf32> to vector<64x4xf32>
    %22 = arith.truncf %21 : vector<64x4xf32> to vector<64x4xbf16>
    %23 = vector.extract_strided_slice %5 {offsets = [0, 1, 0], sizes = [8, 8, 4], strides = [1, 1, 1]} : vector<8x9x4xf32> to vector<8x8x4xf32>
    %24 = vector.shape_cast %23 : vector<8x8x4xf32> to vector<64x4xf32>
    %25 = arith.truncf %24 : vector<64x4xf32> to vector<64x4xbf16>
    %26 = vector.extract_strided_slice %1 {offsets = [1, 0, 0], sizes = [8, 8, 4], strides = [1, 1, 1]} : vector<9x9x4xf32> to vector<8x8x4xf32>
    %27 = vector.shape_cast %26 : vector<8x8x4xf32> to vector<64x4xf32>
    %28 = arith.truncf %27 : vector<64x4xf32> to vector<64x4xbf16>
    %29 = vector.extract_strided_slice %3 {offsets = [1, 0, 0], sizes = [8, 8, 4], strides = [1, 1, 1]} : vector<9x9x4xf32> to vector<8x8x4xf32>
    %30 = vector.shape_cast %29 : vector<8x8x4xf32> to vector<64x4xf32>
    %31 = arith.truncf %30 : vector<64x4xf32> to vector<64x4xbf16>
    %32 = vector.extract_strided_slice %1 {offsets = [1, 1, 0], sizes = [8, 8, 4], strides = [1, 1, 1]} : vector<9x9x4xf32> to vector<8x8x4xf32>
    %33 = vector.shape_cast %32 : vector<8x8x4xf32> to vector<64x4xf32>
    %34 = arith.truncf %33 : vector<64x4xf32> to vector<64x4xbf16>
    %35 = tpu.concatenate %10, %13, %16, %19, %22, %25, %28, %31, %34 in 1 : vector<64x4xbf16>, vector<64x4xbf16>, vector<64x4xbf16>, vector<64x4xbf16>, vector<64x4xbf16>, vector<64x4xbf16>, vector<64x4xbf16>, vector<64x4xbf16>, vector<64x4xbf16> -> vector<64x36xbf16>
    %c0_15 = arith.constant 0 : index
    %c0_16 = arith.constant 0 : index
    %36 = vector.load %arg6[%c0_15, %c0_16] : memref<36x4xf32, #tpu.memory_space<vmem>>, vector<36x4xf32>
    %37 = arith.truncf %36 : vector<36x4xf32> to vector<36x4xbf16>
    %cst = arith.constant dense<0.000000e+00> : vector<64x4xf32>
    %38 = tpu.matmul %35, %37, %cst {dimension_numbers = #tpu.dot_dimension_numbers<[1], [0], [0], [1], [0, 0, 1, 1], [], []>} : vector<64x36xbf16>, vector<36x4xbf16>, vector<64x4xf32> -> vector<64x4xf32>
    %c0_17 = arith.constant 0 : index
    %c0_18 = arith.constant 0 : index
    %39 = vector.load %arg7[%c0_17, %c0_18] : memref<1x4xf32, #tpu.memory_space<vmem>>, vector<1x4xf32>
    %40 = vector.broadcast %39 : vector<1x4xf32> to vector<64x4xf32>
    %41 = arith.addf %38, %40 : vector<64x4xf32>
    %42 = vector.shape_cast %41 : vector<64x4xf32> to vector<8x8x4xf32>
    %c0_19 = arith.constant 0 : index
    %c0_20 = arith.constant 0 : index
    %c0_21 = arith.constant 0 : index
    %c0_22 = arith.constant 0 : index
    %43 = vector.load %arg8[%c0_19, %c0_20, %c0_21, %c0_22] : memref<1x8x8x4xf32, #tpu.memory_space<vmem>>, vector<1x8x8x4xf32>
    %44 = vector.shape_cast %43 : vector<1x8x8x4xf32> to vector<8x8x4xf32>
    %45 = vector.shape_cast %42 : vector<8x8x4xf32> to vector<1x8x8x4xf32>
    tpu.vector_store %arg8[%c0_19, %c0_20, %c0_21, %c0_22], %45 {strides = array<i32>} : memref<1x8x8x4xf32, #tpu.memory_space<vmem>>, vector<1x8x8x4xf32>,
    return
  }
  func.func @transform_0(%arg0: i32, %arg1: i32) -> (i32, i32, i32, i32) {
    %c1_i32 = arith.constant 1 : i32
    %0 = arith.muli %arg0, %c1_i32 : i32
    %1 = arith.addi %0, %arg1 : i32
    %c0_i32 = arith.constant 0 : i32
    %c0_i32_0 = arith.constant 0 : i32
    %c0_i32_1 = arith.constant 0 : i32
    %c0_i32_2 = arith.constant 0 : i32
    return %1, %c0_i32, %c0_i32_0, %c0_i32_1 : i32, i32, i32, i32
  }
  func.func @transform_1(%arg0: i32, %arg1: i32) -> (i32, i32, i32, i32) {
    %c1_i32 = arith.constant 1 : i32
    %0 = arith.muli %arg0, %c1_i32 : i32
    %1 = arith.addi %0, %arg1 : i32
    %c0_i32 = arith.constant 0 : i32
    %c0_i32_0 = arith.constant 0 : i32
    %c0_i32_1 = arith.constant 0 : i32
    %c0_i32_2 = arith.constant 0 : i32
    return %1, %c0_i32, %c0_i32_0, %c0_i32_1 : i32, i32, i32, i32
  }
  func.func @transform_2(%arg0: i32, %arg1: i32) -> (i32, i32, i32, i32) {
    %c0_i32 = arith.constant 0 : i32
    %c0_i32_0 = arith.constant 0 : i32
    %c0_i32_1 = arith.constant 0 : i32
    return %arg0, %arg1, %c0_i32, %c0_i32_0 : i32, i32, i32, i32
  }
  func.func @transform_3(%arg0: i32, %arg1: i32) -> (i32, i32, i32, i32) {
    %c0_i32 = arith.constant 0 : i32
    %c0_i32_0 = arith.constant 0 : i32
    %c0_i32_1 = arith.constant 0 : i32
    return %arg0, %arg1, %c0_i32, %c0_i32_0 : i32, i32, i32, i32
  }
  func.func @transform_4(%arg0: i32, %arg1: i32) -> (i32, i32) {
    %c0_i32 = arith.constant 0 : i32
    %c0_i32_0 = arith.constant 0 : i32
    %c0_i32_1 = arith.constant 0 : i32
    return %c0_i32, %c0_i32_0 : i32, i32
  }
  func.func @transform_5(%arg0: i32, %arg1: i32) -> (i32, i32) {
    %c0_i32 = arith.constant 0 : i32
    %c0_i32_0 = arith.constant 0 : i32
    %c0_i32_1 = arith.constant 0 : i32
    return %c0_i32, %c0_i32_0 : i32, i32
  }
  func.func @transform_6(%arg0: i32, %arg1: i32) -> (i32, i32, i32, i32) {
    %c0_i32 = arith.constant 0 : i32
    %c0_i32_0 = arith.constant 0 : i32
    %c0_i32_1 = arith.constant 0 : i32
    return %arg0, %arg1, %c0_i32, %c0_i32_0 : i32, i32, i32, i32
  }
}

module attributes {stable_mosaic.version = 11 : i64} {
  func.func @kernel(%arg0: i32, %arg1: i32, %arg2: memref<1x9x9x4xf32, #tpu.memory_space<vmem>>, %arg3: memref<1x9x9x4xf32, #tpu.memory_space<vmem>>, %arg4: memref<1x8x9x4xf32, #tpu.memory_space<vmem>>, %arg5: memref<1x8x9x4xf32, #tpu.memory_space<vmem>>, %arg6: memref<36x4xf32, #tpu.memory_space<vmem>>, %arg7: memref<1x4xf32, #tpu.memory_space<vmem>>, %arg8: memref<1x8x8x4xf32, #tpu.memory_space<vmem>>) attributes {dimension_semantics = [#tpu.dimension_semantics<parallel>, #tpu.dimension_semantics<parallel>], iteration_bounds = array<i64: 2, 1>, scalar_prefetch = 0 : i64, scratch_operands = 0 : i64, tpu.core_type = #tpu.core_type<tc>, window_params = [{transform_indices = @transform_0, window_bounds = array<i64: 1, 9, 9, 4>}, {transform_indices = @transform_1, window_bounds = array<i64: 1, 9, 9, 4>}, {transform_indices = @transform_2, window_bounds = array<i64: 1, 8, 9, 4>}, {transform_indices = @transform_3, window_bounds = array<i64: 1, 8, 9, 4>}, {pipeline_mode = #tpu.pipeline_mode<synchronous>, transform_indices = @transform_4, window_bounds = array<i64: 36, 4>}, {pipeline_mode = #tpu.pipeline_mode<synchronous>, transform_indices = @transform_5, window_bounds = array<i64: 1, 4>}, {transform_indices = @transform_6, window_bounds = array<i64: 1, 8, 8, 4>}]} {
    %c0 = arith.constant 0 : index
    %c0_0 = arith.constant 0 : index
    %c0_1 = arith.constant 0 : index
    %c0_2 = arith.constant 0 : index
    %0 = vector.load %arg2[%c0, %c0_0, %c0_1, %c0_2] : memref<1x9x9x4xf32, #tpu.memory_space<vmem>>, vector<1x9x9x4xf32>
    %1 = vector.shape_cast %0 : vector<1x9x9x4xf32> to vector<9x9x4xf32>
    %c0_3 = arith.constant 0 : index
    %c0_4 = arith.constant 0 : index
    %c0_5 = arith.constant 0 : index
    %c0_6 = arith.constant 0 : index
    %2 = vector.load %arg3[%c0_3, %c0_4, %c0_5, %c0_6] : memref<1x9x9x4xf32, #tpu.memory_space<vmem>>, vector<1x9x9x4xf32>
    %3 = vector.shape_cast %2 : vector<1x9x9x4xf32> to vector<9x9x4xf32>
    %c0_7 = arith.constant 0 : index
    %c0_8 = arith.constant 0 : index
    %c0_9 = arith.constant 0 : index
    %c0_10 = arith.constant 0 : index
    %4 = vector.load %arg4[%c0_7, %c0_8, %c0_9, %c0_10] : memref<1x8x9x4xf32, #tpu.memory_space<vmem>>, vector<1x8x9x4xf32>
    %5 = vector.shape_cast %4 : vector<1x8x9x4xf32> to vector<8x9x4xf32>
    %c0_11 = arith.constant 0 : index
    %c0_12 = arith.constant 0 : index
    %c0_13 = arith.constant 0 : index
    %c0_14 = arith.constant 0 : index
    %6 = vector.load %arg5[%c0_11, %c0_12, %c0_13, %c0_14] : memref<1x8x9x4xf32, #tpu.memory_space<vmem>>, vector<1x8x9x4xf32>
    %7 = vector.shape_cast %6 : vector<1x8x9x4xf32> to vector<8x9x4xf32>
    %8 = vector.extract_strided_slice %1 {offsets = [0, 0, 0], sizes = [8, 8, 4], strides = [1, 1, 1]} : vector<9x9x4xf32> to vector<8x8x4xf32>
    %9 = vector.shape_cast %8 : vector<8x8x4xf32> to vector<64x4xf32>
    %10 = arith.truncf %9 : vector<64x4xf32> to vector<64x4xbf16>
    %11 = vector.extract_strided_slice %3 {offsets = [0, 0, 0], sizes = [8, 8, 4], strides = [1, 1, 1]} : vector<9x9x4xf32> to vector<8x8x4xf32>
    %12 = vector.shape_cast %11 : vector<8x8x4xf32> to vector<64x4xf32>
    %13 = arith.truncf %12 : vector<64x4xf32> to vector<64x4xbf16>
    %14 = vector.extract_strided_slice %1 {offsets = [0, 1, 0], sizes = [8, 8, 4], strides = [1, 1, 1]} : vector<9x9x4xf32> to vector<8x8x4xf32>
    %15 = vector.shape_cast %14 : vector<8x8x4xf32> to vector<64x4xf32>
    %16 = arith.truncf %15 : vector<64x4xf32> to vector<64x4xbf16>
    %17 = vector.extract_strided_slice %5 {offsets = [0, 0, 0], sizes = [8, 8, 4], strides = [1, 1, 1]} : vector<8x9x4xf32> to vector<8x8x4xf32>
    %18 = vector.shape_cast %17 : vector<8x8x4xf32> to vector<64x4xf32>
    %19 = arith.truncf %18 : vector<64x4xf32> to vector<64x4xbf16>
    %20 = vector.extract_strided_slice %7 {offsets = [0, 0, 0], sizes = [8, 8, 4], strides = [1, 1, 1]} : vector<8x9x4xf32> to vector<8x8x4xf32>
    %21 = vector.shape_cast %20 : vector<8x8x4xf32> to vector<64x4xf32>
    %22 = arith.truncf %21 : vector<64x4xf32> to vector<64x4xbf16>
    %23 = vector.extract_strided_slice %5 {offsets = [0, 1, 0], sizes = [8, 8, 4], strides = [1, 1, 1]} : vector<8x9x4xf32> to vector<8x8x4xf32>
    %24 = vector.shape_cast %23 : vector<8x8x4xf32> to vector<64x4xf32>
    %25 = arith.truncf %24 : vector<64x4xf32> to vector<64x4xbf16>
    %26 = vector.extract_strided_slice %1 {offsets = [1, 0, 0], sizes = [8, 8, 4], strides = [1, 1, 1]} : vector<9x9x4xf32> to vector<8x8x4xf32>
    %27 = vector.shape_cast %26 : vector<8x8x4xf32> to vector<64x4xf32>
    %28 = arith.truncf %27 : vector<64x4xf32> to vector<64x4xbf16>
    %29 = vector.extract_strided_slice %3 {offsets = [1, 0, 0], sizes = [8, 8, 4], strides = [1, 1, 1]} : vector<9x9x4xf32> to vector<8x8x4xf32>
    %30 = vector.shape_cast %29 : vector<8x8x4xf32> to vector<64x4xf32>
    %31 = arith.truncf %30 : vector<64x4xf32> to vector<64x4xbf16>
    %32 = vector.extract_strided_slice %1 {offsets = [1, 1, 0], sizes = [8, 8, 4], strides = [1, 1, 1]} : vector<9x9x4xf32> to vector<8x8x4xf32>
    %33 = vector.shape_cast %32 : vector<8x8x4xf32> to vector<64x4xf32>
    %34 = arith.truncf %33 : vector<64x4xf32> to vector<64x4xbf16>
    %35 = tpu.concatenate %10, %13, %16, %19, %22, %25, %28, %31, %34 in 1 : vector<64x4xbf16>, vector<64x4xbf16>, vector<64x4xbf16>, vector<64x4xbf16>, vector<64x4xbf16>, vector<64x4xbf16>, vector<64x4xbf16>, vector<64x4xbf16>, vector<64x4xbf16> -> vector<64x36xbf16>
    %c0_15 = arith.constant 0 : index
    %c0_16 = arith.constant 0 : index
    %36 = vector.load %arg6[%c0_15, %c0_16] : memref<36x4xf32, #tpu.memory_space<vmem>>, vector<36x4xf32>
    %37 = arith.truncf %36 : vector<36x4xf32> to vector<36x4xbf16>
    %cst = arith.constant dense<0.000000e+00> : vector<64x4xf32>
    %38 = tpu.matmul %35, %37, %cst {dimension_numbers = #tpu.dot_dimension_numbers<[1], [0], [0], [1], [0, 0, 1, 1], [], []>} : vector<64x36xbf16>, vector<36x4xbf16>, vector<64x4xf32> -> vector<64x4xf32>
    %c0_17 = arith.constant 0 : index
    %c0_18 = arith.constant 0 : index
    %39 = vector.load %arg7[%c0_17, %c0_18] : memref<1x4xf32, #tpu.memory_space<vmem>>, vector<1x4xf32>
    %40 = vector.broadcast %39 : vector<1x4xf32> to vector<64x4xf32>
    %41 = arith.addf %38, %40 : vector<64x4xf32>
    %42 = vector.shape_cast %41 : vector<64x4xf32> to vector<8x8x4xf32>
    %c0_19 = arith.constant 0 : index
    %c0_20 = arith.constant 0 : index
    %c0_21 = arith.constant 0 : index
    %c0_22 = arith.constant 0 : index
    %43 = vector.load %arg8[%c0_19, %c0_20, %c0_21, %c0_22] : memref<1x8x8x4xf32, #tpu.memory_space<vmem>>, vector<1x8x8x4xf32>
    %44 = vector.shape_cast %43 : vector<1x8x8x4xf32> to vector<8x8x4xf32>
    %45 = vector.shape_cast %42 : vector<8x8x4xf32> to vector<1x8x8x4xf32>
    tpu.vector_store %arg8[%c0_19, %c0_20, %c0_21, %c0_22], %45 {strides = array<i32>} : memref<1x8x8x4xf32, #tpu.memory_space<vmem>>, vector<1x8x8x4xf32>,
    return
  }
  func.func @transform_0(%arg0: i32, %arg1: i32) -> (i32, i32, i32, i32) {
    %c1_i32 = arith.constant 1 : i32
    %0 = arith.muli %arg0, %c1_i32 : i32
    %1 = arith.addi %0, %arg1 : i32
    %c0_i32 = arith.constant 0 : i32
    %c0_i32_0 = arith.constant 0 : i32
    %c0_i32_1 = arith.constant 0 : i32
    %c0_i32_2 = arith.constant 0 : i32
    return %1, %c0_i32, %c0_i32_0, %c0_i32_1 : i32, i32, i32, i32
  }
  func.func @transform_1(%arg0: i32, %arg1: i32) -> (i32, i32, i32, i32) {
    %c1_i32 = arith.constant 1 : i32
    %0 = arith.muli %arg0, %c1_i32 : i32
    %1 = arith.addi %0, %arg1 : i32
    %c0_i32 = arith.constant 0 : i32
    %c0_i32_0 = arith.constant 0 : i32
    %c0_i32_1 = arith.constant 0 : i32
    %c0_i32_2 = arith.constant 0 : i32
    return %1, %c0_i32, %c0_i32_0, %c0_i32_1 : i32, i32, i32, i32
  }
  func.func @transform_2(%arg0: i32, %arg1: i32) -> (i32, i32, i32, i32) {
    %c0_i32 = arith.constant 0 : i32
    %c0_i32_0 = arith.constant 0 : i32
    %c0_i32_1 = arith.constant 0 : i32
    return %arg0, %arg1, %c0_i32, %c0_i32_0 : i32, i32, i32, i32
  }
  func.func @transform_3(%arg0: i32, %arg1: i32) -> (i32, i32, i32, i32) {
    %c0_i32 = arith.constant 0 : i32
    %c0_i32_0 = arith.constant 0 : i32
    %c0_i32_1 = arith.constant 0 : i32
    return %arg0, %arg1, %c0_i32, %c0_i32_0 : i32, i32, i32, i32
  }
  func.func @transform_4(%arg0: i32, %arg1: i32) -> (i32, i32) {
    %c0_i32 = arith.constant 0 : i32
    %c0_i32_0 = arith.constant 0 : i32
    %c0_i32_1 = arith.constant 0 : i32
    return %c0_i32, %c0_i32_0 : i32, i32
  }
  func.func @transform_5(%arg0: i32, %arg1: i32) -> (i32, i32) {
    %c0_i32 = arith.constant 0 : i32
    %c0_i32_0 = arith.constant 0 : i32
    %c0_i32_1 = arith.constant 0 : i32
    return %c0_i32, %c0_i32_0 : i32, i32
  }
  func.func @transform_6(%arg0: i32, %arg1: i32) -> (i32, i32, i32, i32) {
    %c0_i32 = arith.constant 0 : i32
    %c0_i32_0 = arith.constant 0 : i32
    %c0_i32_1 = arith.constant 0 : i32
    return %arg0, %arg1, %c0_i32, %c0_i32_0 : i32, i32, i32, i32
  }
}

</mosaic_0001>

<bundles_post_ra>
// kernel: tpu_custom_call.1
= control target key start
LH: loop header
LB: loop body
LE: loop exit
PB: predicated region body
PF: predicated region fallthrough
CT: control target
= control target key end

     0   :  { %s1200_s21 = smov 0   ;;  %s1202_s22 = smov 0   ;;  %s1552_s0 = inlined_call_operand.vmem [shape: f32[2,9,9,4], index: 0, kind: input, shape index: {}]   ;;  %s1553_s1 = inlined_call_operand.vmem [shape: f32[2,9,9,4], index: 1, kind: input, shape index: {}]   ;;  %s1554_s2 = inlined_call_operand.vmem [shape: f32[2,8,9,4], index: 2, kind: input, shape index: {}]   ;;  %s1555_s3 = inlined_call_operand.vmem [shape: f32[2,8,9,4], index: 3, kind: input, shape index: {}]   ;;  %s1556_s4 = inlined_call_operand.vmem [shape: f32[36,4], index: 4, kind: input, shape index: {}]   ;;  %s1557_s5 = inlined_call_operand.vmem [shape: f32[1,4], index: 5, kind: input, shape index: {}]   ;;  %s1558_s6 = inlined_call_operand.vmem [shape: f32[2,8,8,4], index: 6, kind: output, shape index: {}]  }
   0x1   :  { %s1204_s23 = smov 0  }
   0x2 LB: > { %s28_s24 = sadd.s32 1, %s1151_s22  ;;  %p1072_p0 = scmp.ge.s32.totalorder %s1155_s23, 1  ;;  %s1155_s23 = sphi %s1204_s23, %s16_s23   ;;  %s1151_s22 = sphi %s1202_s22, %s1560_s22   ;;  %s1147_s21 = sphi %s1200_s21, %s1559_s21  }
   0x3   : > { %p30_p1 = scmp.ge.s32.totalorder %s28_s24, 2  ;;  %p280_p2 = scmp.lt.s32.totalorder %s1155_s23, 3 }
   0x5   : > { %s1562_s24 = smov (%p30_p1, %s28_s24), 0  ;;  %p281_p3 = pnand %p1072_p0, %p280_p2 }
   0x6   : > { %p342_p4 = scmp.lt.s32.totalorder (!%p281_p3), %s1147_s21, 1  ;;  %s1157_s15 = smov (!%p281_p3), 16  }
   0x7   : > { %284 = sbr.rel (%p281_p3) target bundleno = 357 (0x165), region = 44  ;;  %s1158_s16 = smov (!%p281_p3), 4  }
   0x8   : > { %s1159_s17 = smov (!%p281_p3), 12   ;;  %s1160_s18 = smov (!%p281_p3), 8  }
   0x9   : > { %s1161_s19 = smov (!%p281_p3), 20   ;;  %s1162_s20 = smov (!%p281_p3), 24  }
   0xc   : > { %s1564_s21 = smov (!%p342_p4, %s1147_s21), 1  ;;  %vm471_vm0 = vcmask 1046528   ;;  %vm892_vm1 = vcmask 1041408   ;;  %vm795_vm2 = vcmask 31744   ;;  %vm808_vm3 = vcmask 64512  }
   0xd   : > { %s1087_s25 = sshll.u32 %s1564_s21, 7  ;;  %s1099_s26 = smul.u32 144, %s1564_s21  ;;  %vm817_vm4 = vcmask 97280   ;;  %vm826_vm5 = vcmask 130048   ;;  %vm835_vm6 = vcmask 162816   ;;  %vm844_vm7 = vcmask 195584  }
   0xe   : > { %s1225_s29 = scalar_lea.vmem %s1555_s3, %s1087_s25  ;;  %s1230_s8 = scalar_lea.vmem %s1554_s2, %s1087_s25  ;;  %vm853_vm8 = vcmask 228352   ;;  %vm862_vm9 = vcmask 261120   ;;  %vm883_vm10 = vcmask 293888  }
   0xf   : > { %v437_v0 = vld [vmem:[%s1225_s29 + $0x60] sm:$0xff]  ;;  %v438_v1 = vld [vmem:[%s1225_s29 + $0x70] sm:$0xff]  ;;  %s1237_s11 = scalar_lea.vmem %s1553_s1, %s1099_s26  ;;  %s1242_s14 = scalar_lea.vmem %s1552_s0, %s1099_s26  ;;  %v428_v61 = vld [vmem:[%s1230_s8 + $0x68] sm:$0x1] }
  0x10   : > { %v1245_v2 = vld [vmem:[%s1230_s8 + $0x40] sm:$0xff]  ;;  %v526_v3 = vpack.c.bf16 %v437_v0, %v437_v0  ;;  %v527_v4 = vpack.c.bf16 %v438_v1, %v438_v1  ;;  %v411_v6 = vld [vmem:[%s1237_s11 + $0x50] sm:$0xff]  ;;  %v397_v10 = vld [vmem:[%s1242_s14 + $0x48] sm:$0x1]  ;;  %s1163_s25 = smov 28   ;;  %s1164_s26 = smov 32  }
  0x11   : > { %v410_v5 = vld [vmem:[%s1237_s11 + $0x40] sm:$0xff]  ;;  %v452_v9 = vpack.c.bf16 %v411_v6, %v411_v6  ;;  %v1254_v11 = vld [vmem:[%s1242_s14 + $0x50] sm:$0xff]  ;;  %v399_v12 = vld [vmem:[%s1242_s14 + $0x58] sm:$0x1]  ;;  %v516_v14 = vpack.c.bf16 %v1245_v2, %v1245_v2  ;;  %v485_v17 = vrot.slane %v397_v10, 1  ;;  %v556_v63 = vrot.slane %v1245_v2, 1 }
  0x12   : > { %v1250_v7 = vld [vmem:[%s1242_s14 + $0x40] sm:$0xff]  ;;  %v451_v8 = vpack.c.bf16 %v410_v5, %v410_v5  ;;  %v711_v15 = vunpack.c.l.b16 %v526_v3  ;;  %v712_v16 = vunpack.c.l.b16 %v527_v4  ;;  %v487_v18 = vrot.slane %v1254_v11, 1  ;;  %v413_v20 = vld [vmem:[%s1237_s11 + $0x70] sm:$0xff]  ;;  %v401_v26 = vld [vmem:[%s1242_s14 + $0x68] sm:$0x1]  ;;  %s1089_s13 = sshll.u32 %s1564_s21, 6 }
  0x13   : > { %v484_v13 = vrot.slane %v1250_v7, 1  ;;  %v412_v19 = vld [vmem:[%s1237_s11 + $0x60] sm:$0xff]  ;;  %v1268_v23 = vunpack.c.l.b16 %v452_v9  ;;  %v488_v24 = vrot.slane %v399_v12, 1  ;;  %v1272_v27 = vld [vmem:[%s1242_s14 + $0x70] sm:$0xff]  ;;  %v454_v30 = vpack.c.bf16 %v413_v20, %v413_v20  ;;  %v403_v31 = vld [vmem:[%s1242_s14 + $0x78] sm:$0x1] }
  0x14   : > { %v1264_v21 = vld [vmem:[%s1242_s14 + $0x60] sm:$0xff]  ;;  %v1266_v22 = vunpack.c.l.b16 %v451_v8  ;;  %v453_v25 = vpack.c.bf16 %v412_v19, %v412_v19  ;;  %v716_v28 = vpack.c.b16 %v712_v16, %v711_v15  ;;  %v1278_v33 = vld [vmem:[%s1230_s8 + $0x50] sm:$0xff]  ;;  %v491_v39 = vrot.slane %v401_v26, 1  ;;  %v430_v3 = vld [vmem:[%s1230_s8 + $0x78] sm:$0x1] }
  0x15   : > { %v486_v29 = vsel %vm471_vm0, %v484_v13, %v485_v17  ;;  %v490_v32 = vrot.slane %v1264_v21, 1  ;;  %v489_v35 = vsel %vm471_vm0, %v487_v18, %v488_v24  ;;  %v493_v40 = vrot.slane %v1272_v27, 1  ;;  %v435_v41 = vld [vmem:[%s1225_s29 + $0x40] sm:$0xff]  ;;  %v436_v46 = vld [vmem:[%s1225_s29 + $0x50] sm:$0xff]  ;;  %v424_v9 = vld [vmem:[%s1230_s8 + $0x48] sm:$0x1] }
  0x16   : > { %v631_v34 = vpack.c.b16 %v1268_v23, %v1266_v22  ;;  %v508_v36 = vpack.c.bf16 %v486_v29, %v486_v29  ;;  %723 = vrot.lane.b32.xlu1 %v716_v28, %s1157_s15  ;;  %v509_v37 = vpack.c.bf16 %v489_v35, %v489_v35  ;;  %v1284_v38 = vunpack.c.l.b16 %v453_v25  ;;  %v427_v57 = vld [vmem:[%s1230_s8 + $0x60] sm:$0xff]  ;;  %v429_v58 = vld [vmem:[%s1230_s8 + $0x70] sm:$0xff]  ;;  %v426_v10 = vld [vmem:[%s1230_s8 + $0x58] sm:$0x1] }
  0x17   : > { %v1291_v43 = vunpack.c.l.b16 %v454_v30  ;;  %v494_v44 = vrot.slane %v403_v31, 1  ;;  %v517_v45 = vpack.c.bf16 %v1278_v33, %v1278_v33  ;;  %v492_v48 = vsel %vm471_vm0, %v490_v32, %v491_v39 }
  0x18   : > { %637 = vrot.lane.b32.xlu0 %v631_v34, %s1158_s16  ;;  %v1289_v42 = vunpack.c.l.b16 %v508_v36  ;;  %v1296_v47 = vunpack.c.l.b16 %v509_v37  ;;  %v681_v49 = vunpack.c.l.b16 %v516_v14  ;;  %v510_v51 = vpack.c.bf16 %v492_v48, %v492_v48  ;;  %v408_v36 = vld [vmem:[%s1237_s11 + $0x20] sm:$0xff]  ;;  %v389_v48 = vld [vmem:[%s1242_s14 + $0x8] sm:$0x1] }
  0x19   : > { %v495_v50 = vsel %vm471_vm0, %v493_v40, %v494_v44  ;;  %v682_v52 = vunpack.c.l.b16 %v517_v45  ;;  %v524_v53 = vpack.c.bf16 %v435_v41, %v435_v41  ;;  %v525_v56 = vpack.c.bf16 %v436_v46, %v436_v46  ;;  %v409_v40 = vld [vmem:[%s1237_s11 + $0x30] sm:$0xff]  ;;  %v1338_v41 = vld [vmem:[%s1242_s14] sm:$0xff] }
  0x1a   : > { %v659_v54 = vpack.c.b16 %v1296_v47, %v1289_v42  ;;  %v511_v55 = vpack.c.bf16 %v495_v50, %v495_v50  ;;  %v632_v59 = vpack.c.b16 %v1291_v43, %v1284_v38  ;;  %v1307_v62 = vunpack.c.l.b16 %v510_v51  ;;  %v1341_v44 = vld [vmem:[%s1242_s14 + $0x80] sm:$0xff]  ;;  %v391_v50 = vld [vmem:[%s1242_s14 + $0x18] sm:$0x1] }
  0x1b   : > { %v687_v60 = vpack.c.b16 %v682_v52, %v681_v49  ;;  %v559_v0 = vrot.slane %v1278_v33, 1  ;;  %v518_v1 = vpack.c.bf16 %v427_v57, %v427_v57  ;;  %v709_v4 = vunpack.c.l.b16 %v524_v53  ;;  %v1346_v49 = vld [vmem:[%s1242_s14 + $0x10] sm:$0xff]  ;;  %v406_v53 = vld [vmem:[%s1237_s11] sm:$0xff] }
  0x1c   : > { %v519_v5 = vpack.c.bf16 %v429_v58, %v429_v58  ;;  %v562_v6 = vrot.slane %v427_v57, 1  ;;  %v565_v8 = vrot.slane %v429_v58, 1  ;;  %v1316_v12 = vunpack.c.l.b16 %v511_v55 }
  0x1d   : > { %693 = vrot.lane.b32.xlu2 %v687_v60, %s1159_s17  ;;  %v710_v13 = vunpack.c.l.b16 %v525_v56  ;;  %v683_v2 = vunpack.c.l.b16 %v518_v1  ;;  %v563_v14 = vrot.slane %v428_v61, 1  ;;  %v444_v15 = vpack.c.bf16 %v1254_v11, %v1254_v11 }
  0x1e   : > { %665 = vrot.lane.b32.xlu1 %v659_v54, %s1160_s18  ;;  %v684_v16 = vunpack.c.l.b16 %v519_v5  ;;  %v566_v17 = vrot.slane %v430_v3, 1  ;;  %v445_v18 = vpack.c.bf16 %v1264_v21, %v1264_v21  ;;  %v557_v20 = vrot.slane %v424_v9, 1  ;;  %v407_v54 = vld [vmem:[%s1237_s11 + $0x10] sm:$0xff] }
  0x1f   : > { %v564_v19 = vsel %vm471_vm0, %v562_v6, %v563_v14  ;;  %v560_v24 = vrot.slane %v426_v10, 1  ;;  %v660_v28 = vpack.c.b16 %v1316_v12, %v1307_v62  ;;  %v715_v29 = vpack.c.b16 %v710_v13, %v709_v4  ;;  %v1370_v10 = vld [vmem:[%s1242_s14 + $0x20] sm:$0xff]  ;;  %v393_v14 = vld [vmem:[%s1242_s14 + $0x28] sm:$0x1] }
  0x20   : > { %639 = vrot.lane.b32.xlu0 %v632_v59, %s1158_s16  ;;  %v688_v25 = vpack.c.b16 %v684_v16, %v683_v2  ;;  %v567_v26 = vsel %vm471_vm0, %v565_v8, %v566_v17  ;;  %v558_v11 = vsel %vm471_vm0, %v556_v63, %v557_v20  ;;  %v582_v21 = vpack.c.bf16 %v564_v19, %v564_v19  ;;  %v395_v16 = vld [vmem:[%s1242_s14 + $0x38] sm:$0x1]  ;;  %v414_v17 = vld [vmem:[%s1237_s11 + $0x80] sm:$0xff] }
  0x21   : > { %v561_v30 = vsel %vm471_vm0, %v559_v0, %v560_v24  ;;  %v583_v31 = vpack.c.bf16 %v567_v26, %v567_v26  ;;  %v580_v32 = vpack.c.bf16 %v558_v11, %v558_v11  ;;  %v1329_v34 = vunpack.c.l.b16 %v444_v15  ;;  %v1377_v15 = vld [vmem:[%s1242_s14 + $0x30] sm:$0xff] }
  0x22   : > { %v581_v33 = vpack.c.bf16 %v561_v30, %v561_v30  ;;  %v1331_v35 = vunpack.c.l.b16 %v445_v18  ;;  %v739_v45 = vunpack.c.l.b16 %v582_v21  ;;  %v449_v52 = vpack.c.bf16 %v408_v36, %v408_v36  ;;  %v405_v18 = vld [vmem:[%s1242_s14 + $0x88] sm:$0x1] }
  0x23   : > { %v737_v37 = vunpack.c.l.b16 %v580_v32  ;;  %v740_v46 = vunpack.c.l.b16 %v583_v31  ;;  %v450_v55 = vpack.c.bf16 %v409_v40, %v409_v40  ;;  %v446_v57 = vpack.c.bf16 %v1272_v27, %v1272_v27 }
  0x24   : > { %v738_v39 = vunpack.c.l.b16 %v581_v33  ;;  %v757_v51 = vpack.c.b16 %v1331_v35, %v1329_v34  ;;  %v584_v58 = vpack.c.bf16 %v1341_v44, %v1341_v44  ;;  %v472_v59 = vrot.slane %v1338_v41, 1 }
  0x25   : > { %695 = vrot.lane.b32.xlu2 %v688_v25, %s1159_s17  ;;  %v473_v60 = vrot.slane %v389_v48, 1  ;;  %v475_v61 = vrot.slane %v1346_v49, 1  ;;  %v476_v63 = vrot.slane %v391_v50, 1  ;;  %v744_v0 = vpack.c.b16 %v740_v46, %v739_v45 }
  0x26   : > { %667 = vrot.lane.b32.xlu1 %v660_v28, %s1160_s18  ;;  %v743_v56 = vpack.c.b16 %v738_v39, %v737_v37  ;;  %v447_v1 = vpack.c.bf16 %v406_v53, %v406_v53  ;;  %v448_v3 = vpack.c.bf16 %v407_v54, %v407_v54  ;;  %v1359_v4 = vunpack.c.l.b16 %v449_v52 }
  0x27   : > { %v1361_v5 = vunpack.c.l.b16 %v450_v55  ;;  %v1364_v27 = vunpack.c.l.b16 %v446_v57  ;;  %v754_v6 = vunpack.c.l.b16 %v584_v58  ;;  %v474_v8 = vsel %vm471_vm0, %v472_v59, %v473_v60  ;;  %v432_v55 = vld [vmem:[%s1225_s29 + $0x10] sm:$0xff]  ;;  %v422_v59 = vld [vmem:[%s1230_s8 + $0x38] sm:$0x1]  ;;  %v415_v60 = vld [vmem:[%s1230_s8] sm:$0xff] }
  0x28   : > { %721 = vrot.lane.b32.xlu0 %v715_v29, %s1157_s15  ;;  %v477_v9 = vsel %vm471_vm0, %v475_v61, %v476_v63  ;;  %v621_v13 = vunpack.c.l.b16 %v447_v1  ;;  %v1373_v2 = vunpack.c.l.b16 %v448_v3  ;;  %v504_v20 = vpack.c.bf16 %v474_v8, %v474_v8  ;;  %v421_v57 = vld [vmem:[%s1230_s8 + $0x30] sm:$0xff]  ;;  %v416_v1 = vld [vmem:[%s1230_s8 + $0x8] sm:$0x1]  ;;  %v418_v3 = vld [vmem:[%s1230_s8 + $0x18] sm:$0x1] }
  0x29   : > { %v630_v19 = vpack.c.b16 %v1361_v5, %v1359_v4  ;;  %v505_v24 = vpack.c.bf16 %v477_v9, %v477_v9  ;;  %v758_v25 = vpack.c.b16 %v754_v6, %v1364_v27  ;;  %v478_v26 = vrot.slane %v1370_v10, 1  ;;  %v417_v61 = vld [vmem:[%s1230_s8 + $0x10] sm:$0xff] }
  0x2a   : > { %v479_v28 = vrot.slane %v393_v14, 1  ;;  %v481_v29 = vrot.slane %v1377_v15, 1  ;;  %v482_v11 = vrot.slane %v395_v16, 1  ;;  %v629_v30 = vpack.c.b16 %v1373_v2, %v621_v13 }
  0x2b   : > { %v585_v21 = vpack.c.bf16 %v414_v17, %v414_v17  ;;  %v588_v31 = vrot.slane %v1341_v44, 1  ;;  %v589_v32 = vrot.slane %v405_v18, 1  ;;  %v649_v33 = vunpack.c.l.b16 %v504_v20 }
  0x2c   : > { %v1391_v36 = vunpack.c.l.b16 %v505_v24  ;;  %v480_v37 = vsel %vm471_vm0, %v478_v26, %v479_v28  ;;  %v483_v39 = vsel %vm471_vm0, %v481_v29, %v482_v11  ;;  %v771_v44 = vpack.c.b16 %v1284_v38, %v1268_v23  ;;  %v431_v38 = vld [vmem:[%s1225_s29] sm:$0xff] }
  0x2d   : > { %749 = vrot.lane.b32.xlu2 %v743_v56, %s1161_s19  ;;  %v768_v40 = vunpack.c.l.b16 %v585_v21  ;;  %v590_v45 = vsel %vm471_vm0, %v588_v31, %v589_v32  ;;  %v506_v46 = vpack.c.bf16 %v480_v37, %v480_v37  ;;  %v507_v48 = vpack.c.bf16 %v483_v39, %v483_v39  ;;  %v419_v56 = vld [vmem:[%s1230_s8 + $0x20] sm:$0xff] }
  0x2e   : > { %763 = vrot.lane.b32.xlu1 %v757_v51, %s1162_s20  ;;  %v657_v50 = vpack.c.b16 %v1391_v36, %v649_v33  ;;  %v592_v51 = vpack.c.bf16 %v590_v45, %v590_v45  ;;  %v785_v58 = vpack.c.b16 %v1307_v62, %v1296_v47  ;;  %v520_v63 = vpack.c.bf16 %v431_v38, %v431_v38  ;;  %v433_v11 = vld [vmem:[%s1225_s29 + $0x20] sm:$0xff] }
  0x2f   : > { %v772_v52 = vpack.c.b16 %v768_v40, %v1291_v43  ;;  %v1402_v53 = vunpack.c.l.b16 %v506_v46  ;;  %v1404_v54 = vunpack.c.l.b16 %v507_v48  ;;  %v420_v43 = vld [vmem:[%s1230_s8 + $0x28] sm:$0x1]  ;;  %v512_v6 = vpack.c.bf16 %v415_v60, %v415_v60 }
  0x30   : > { %751 = vrot.lane.b32.xlu0 %v744_v0, %s1161_s19  ;;  %v782_v23 = vunpack.c.l.b16 %v592_v51  ;;  %v513_v8 = vpack.c.bf16 %v417_v61, %v417_v61  ;;  %v521_v13 = vpack.c.bf16 %v432_v55, %v432_v55  ;;  %v514_v14 = vpack.c.bf16 %v419_v56, %v419_v56 }
  0x31   : > { %v658_v0 = vpack.c.b16 %v1404_v54, %v1402_v53  ;;  %v515_v16 = vpack.c.bf16 %v421_v57, %v421_v57  ;;  %v550_v17 = vrot.slane %v419_v56, 1  ;;  %v553_v47 = vrot.slane %v421_v57, 1 }
  0x32   : > { %v786_v9 = vpack.c.b16 %v782_v23, %v1316_v12  ;;  %v551_v62 = vrot.slane %v420_v43, 1  ;;  %v554_v18 = vrot.slane %v422_v59, 1  ;;  %v545_v20 = vrot.slane %v416_v1, 1 }
  0x33   : > { %v547_v24 = vrot.slane %v417_v61, 1  ;;  %v677_v26 = vunpack.c.l.b16 %v512_v6  ;;  %v678_v28 = vunpack.c.l.b16 %v513_v8  ;;  %v705_v12 = vunpack.c.l.b16 %v520_v63 }
  0x34   : > { %v706_v29 = vunpack.c.l.b16 %v521_v13  ;;  %v679_v21 = vunpack.c.l.b16 %v514_v14  ;;  %v680_v31 = vunpack.c.l.b16 %v515_v16  ;;  %v552_v32 = vsel %vm471_vm0, %v550_v17, %v551_v62 }
  0x35   : > { %765 = vrot.lane.b32.xlu2 %v758_v25, %s1162_s20  ;;  %v548_v25 = vrot.slane %v418_v3, 1  ;;  %v555_v33 = vsel %vm471_vm0, %v553_v47, %v554_v18  ;;  %v685_v40 = vpack.c.b16 %v678_v28, %v677_v26  ;;  %v522_v45 = vpack.c.bf16 %v433_v11, %v433_v11 }
  0x36   : > { %635 = vrot.lane.b32.xlu1 %v630_v19, %s1158_s16  ;;  %v544_v19 = vrot.slane %v415_v60, 1  ;;  %v713_v46 = vpack.c.b16 %v706_v29, %v705_v12  ;;  %v578_v48 = vpack.c.bf16 %v552_v32, %v552_v32  ;;  %v686_v51 = vpack.c.b16 %v680_v31, %v679_v21 }
  0x37   : > { %v549_v39 = vsel %vm471_vm0, %v547_v24, %v548_v25  ;;  %v707_v38 = vunpack.c.l.b16 %v522_v45  ;;  %v440_v60 = vpack.c.bf16 %v1346_v49, %v1346_v49  ;;  %v441_v61 = vpack.c.bf16 %v1370_v10, %v1370_v10  ;;  %v872_v24 = vld [vmem:[%s1556_s4 + $0x8] sm:$0xff] }
  0x38   : > { %633 = vrot.lane.b32.xlu0 %v629_v30, %s1158_s16  ;;  %v434_v30 = vld [vmem:[%s1225_s29 + $0x30] sm:$0xff]  ;;  %v546_v37 = vsel %vm471_vm0, %v544_v19, %v545_v20  ;;  %v577_v23 = vpack.c.bf16 %v549_v39, %v549_v39  ;;  %v735_v56 = vunpack.c.l.b16 %v578_v48  ;;  %v442_v1 = vpack.c.bf16 %v1377_v15, %v1377_v15  ;;  %v871_v20 = vld [vmem:[%s1556_s4] sm:$0xff] }
  0x39   : > { %v443_v3 = vpack.c.bf16 %v1250_v7, %v1250_v7  ;;  %v1444_v6 = vunpack.c.l.b16 %v440_v60  ;;  %v1446_v8 = vunpack.c.l.b16 %v441_v61  ;;  %v769_v15 = vpack.c.b16 %v1359_v4, %v1373_v2 }
  0x3a   : > { %v1450_v49 = vunpack.c.l.b16 %v442_v1  ;;  %v770_v13 = vpack.c.b16 %v1266_v22, %v1361_v5  ;;  %v784_v14 = vpack.c.b16 %v1289_v42, %v1404_v54  ;;  %v783_v16 = vpack.c.b16 %v1402_v53, %v1391_v36  ;;  %v875_v22 = vld [vmem:[%s1556_s4 + $0x20] sm:$0xf]  ;;  %v873_v53 = vld [vmem:[%s1556_s4 + $0x10] sm:$0xff]  ;;  %v874_v54 = vld [vmem:[%s1556_s4 + $0x18] sm:$0xff] }
  0x3b   : > { %v605_v10 = vunpack.c.l.b16 %v443_v3  ;;  %v878_v5 = vpack.c.bf16 %v875_v22, %v875_v22  ;;  %v877_v19 = vpack.c.bf16 %v874_v54, %v873_v53  ;;  %v876_v25 = vpack.c.bf16 %v872_v24, %v871_v20 }
  0x3c   : > { %v612_v21 = vpack.c.b16 %v1364_v27, %v1331_v35  ;;  %v439_v1 = vpack.c.bf16 %v1338_v41, %v1338_v41 }
  0x3d   : > { %777 = vrot.lane.b32.xlu2 %v771_v44, %s1163_s25  ;;  %v523_v44 = vpack.c.bf16 %v434_v30, %v434_v30  ;;  %v756_v7 = vpack.c.b16 %v605_v10, %v1450_v49  ;;  %v894_v42 = vsel %vm892_vm1, %v878_v5, 0  ;;  %v611_v32 = vpack.c.b16 %v1329_v34, %v605_v10 }
  0x3e   : > { %661 = vrot.lane.b32.xlu1 %v657_v50, %s1160_s18  ;;  %v579_v50 = vpack.c.bf16 %v555_v33, %v555_v33  ;;  %1092 = vmatpush.bf16.msra.mxu3 %v894_v42  ;;  %v601_v3 = vunpack.c.l.b16 %v439_v1  ;;  %v610_v10 = vpack.c.b16 %v1450_v49, %v1446_v8 }
  0x3f   : > { %v708_v55 = vunpack.c.l.b16 %v523_v44  ;;  %1091 = vmatpush.bf16.msra.mxu2 %v894_v42  ;;  %1090 = vmatpush.bf16.msra.mxu1 %v894_v42 }
  0x40   : > { %779 = vrot.lane.b32.xlu0 %v772_v52, %s1163_s25  ;;  %v576_v52 = vpack.c.bf16 %v546_v37, %v546_v37  ;;  %v736_v57 = vunpack.c.l.b16 %v579_v50  ;;  %901 = vmatpush.bf16.msra.mxu0 %v894_v42 }
  0x41   : > { %v714_v59 = vpack.c.b16 %v708_v55, %v707_v38 }
  0x42   : > { %v733_v43 = vunpack.c.l.b16 %v576_v52  ;;  %v742_v63 = vpack.c.b16 %v736_v57, %v735_v56  ;;  %1095 = vmatpush.bf16.msra.mxu3 %v877_v19 }
  0x43   : > { %1094 = vmatpush.bf16.msra.mxu2 %v877_v19  ;;  %1093 = vmatpush.bf16.msra.mxu1 %v877_v19 }
  0x44   : > { %902 = vmatpush.bf16.msra.mxu0 %v877_v19 }
  0x45   : > { %663 = vrot.lane.b32.xlu2 %v658_v0, %s1160_s18  ;;  %s385_s18 = scalar_lea.vmem %s1558_s6, %s1089_s13 }
  0x46   : > { %793 = vrot.lane.b32.xlu1 %v786_v9, %s1164_s26  ;;  %v755_v9 = vpack.c.b16 %v1446_v8, %v1444_v6  ;;  %1098 = vmatpush.bf16.msra.mxu3 %v876_v25 }
  0x47   : > { %1097 = vmatpush.bf16.msra.mxu2 %v876_v25  ;;  %1096 = vmatpush.bf16.msra.mxu1 %v876_v25 }
  0x48   : > { %791 = vrot.lane.b32.xlu0 %v785_v58, %s1164_s26  ;;  %v734_v58 = vunpack.c.l.b16 %v577_v23  ;;  %903 = vmatpush.bf16.msra.mxu0 %v876_v25  ;;  %v1132_v25 = vld [vmem:[%s1557_s5] ss:$0 sm:$0xff] }
  0x4a   : > { %v741_v0 = vpack.c.b16 %v734_v58, %v733_v43 }
  0x4d   : > { %689 = vrot.lane.b32.xlu2 %v685_v40, %s1159_s17 }
  0x4e   : > { %717 = vrot.lane.b32.xlu1 %v713_v46, %s1157_s15 }
  0x50   : > { %691 = vrot.lane.b32.xlu0 %v686_v51, %s1159_s17 }
  0x55   : > { %719 = vrot.lane.b32.xlu2 %v714_v59, %s1157_s15 }
  0x56   : > { %747 = vrot.lane.b32.xlu1 %v742_v63, %s1161_s19 }
  0x58   : > { %745 = vrot.lane.b32.xlu0 %v741_v0, %s1161_s19 }
  0x5d   : > { %759 = vrot.lane.b32.xlu2 %v755_v9, %s1162_s20 }
  0x5e   : > { %773 = vrot.lane.b32.xlu1 %v769_v15, %s1163_s25 }
  0x60   : > { %761 = vrot.lane.b32.xlu0 %v756_v7, %s1162_s20  ;;  %v609_v7 = vpack.c.b16 %v1444_v6, %v601_v3 }
  0x65   : > { %775 = vrot.lane.b32.xlu2 %v770_v13, %s1163_s25 }
  0x66   : > { %789 = vrot.lane.b32.xlu1 %v784_v14, %s1164_s26 }
  0x68   : > { %787 = vrot.lane.b32.xlu0 %v783_v16, %s1164_s26 }
  0x77   : > { %v694_v4 = vpop.permute.xlu2 %693 }
  0x7f   : > { %v696_v2 = vpop.permute.xlu2 %695 }
  0x87   : > { %v750_v62 = vpop.permute.xlu2 %749 }
  0x88   : > { %v724_v17 = vpop.permute.xlu1 %723 }
  0x8a   : > { %v638_v47 = vpop.permute.xlu0 %637 }
  0x8b   : > { %v804_v39 = vsel %vm795_vm2, %v611_v32, %v638_v47 }
  0x8f   : > { %v766_v12 = vpop.permute.xlu2 %765 }
  0x90   : > { %v666_v36 = vpop.permute.xlu1 %665 }
  0x91   : > { %v814_v45 = vsel %vm808_vm3, %v804_v39, %v666_v36 }
  0x92   : > { %v640_v18 = vpop.permute.xlu0 %639  ;;  %v823_v27 = vsel %vm817_vm4, %v814_v45, %v694_v4 }
  0x93   : > { %v807_v37 = vsel %vm795_vm2, %v612_v21, %v640_v18 }
  0x97   : > { %v778_v30 = vpop.permute.xlu2 %777 }
  0x98   : > { %v668_v26 = vpop.permute.xlu1 %667 }
  0x99   : > { %v816_v40 = vsel %vm808_vm3, %v807_v37, %v668_v26 }
  0x9a   : > { %v722_v28 = vpop.permute.xlu0 %721  ;;  %v825_v46 = vsel %vm817_vm4, %v816_v40, %v696_v2 }
  0x9b   : > { %v832_v48 = vsel %vm826_vm5, %v823_v27, %v722_v28  ;;  %v834_v50 = vsel %vm826_vm5, %v825_v46, %v724_v17 }
  0x9c   : > { %v841_v52 = vsel %vm835_vm6, %v832_v48, %v750_v62 }
  0x9f   : > { %v664_v44 = vpop.permute.xlu2 %663 }
  0xa0   : > { %v764_v29 = vpop.permute.xlu1 %763 }
  0xa1   : > { %v850_v23 = vsel %vm844_vm7, %v841_v52, %v764_v29 }
  0xa2   : > { %v752_v11 = vpop.permute.xlu0 %751  ;;  %v859_v57 = vsel %vm853_vm8, %v850_v23, %v778_v30 }
  0xa3   : > { %v843_v51 = vsel %vm835_vm6, %v834_v50, %v752_v11 }
  0xa4   : > { %v852_v38 = vsel %vm844_vm7, %v843_v51, %v766_v12 }
  0xa7   : > { %v690_v43 = vpop.permute.xlu2 %689 }
  0xa8   : > { %v636_v31 = vpop.permute.xlu1 %635 }
  0xa9   : > { %v801_v14 = vsel %vm795_vm2, %v610_v10, %v636_v31 }
  0xaa   : > { %v634_v33 = vpop.permute.xlu0 %633  ;;  %v812_v4 = vsel %vm808_vm3, %v801_v14, %v664_v44 }
  0xab   : > { %v798_v16 = vsel %vm795_vm2, %v609_v7, %v634_v33 }
  0xaf   : > { %v720_v0 = vpop.permute.xlu2 %719 }
  0xb0   : > { %v662_v35 = vpop.permute.xlu1 %661 }
  0xb1   : > { %v810_v2 = vsel %vm808_vm3, %v798_v16, %v662_v35 }
  0xb2   : > { %v780_v34 = vpop.permute.xlu0 %779  ;;  %v819_v22 = vsel %vm817_vm4, %v810_v2, %v690_v43 }
  0xb3   : > { %v861_v55 = vsel %vm853_vm8, %v852_v38, %v780_v34 }
  0xb7   : > { %v760_v13 = vpop.permute.xlu2 %759 }
  0xb8   : > { %v794_v56 = vpop.permute.xlu1 %793 }
  0xb9   : > { %v870_v59 = vsel %vm862_vm9, %v861_v55, %v794_v56 }
  0xba   : > { %v792_v58 = vpop.permute.xlu0 %791  ;;  %1084 = vmatmul.msk.bf16.vlgmr.msra.gmra.mxu3 %vm883_vm10, %v870_v59 }
  0xbb   : > { %v868_v60 = vsel %vm862_vm9, %v859_v57, %v792_v58 }
  0xbc   : > { %1083 = vmatmul.msk.bf16.vlgmr.msra.gmra.mxu2 %vm883_vm10, %v868_v60 }
  0xbf   : > { %v776_v36 = vpop.permute.xlu2 %775 }
  0xc0   : > { %v718_v61 = vpop.permute.xlu1 %717 }
  0xc1   : > { %v828_v6 = vsel %vm826_vm5, %v819_v22, %v718_v61 }
  0xc2   : > { %v692_v63 = vpop.permute.xlu0 %691 }
  0xc3   : > { %v821_v17 = vsel %vm817_vm4, %v812_v4, %v692_v63 }
  0xc4   : > { %v830_v8 = vsel %vm826_vm5, %v821_v17, %v720_v0 }
  0xc8   : > { %v748_v9 = vpop.permute.xlu1 %747 }
  0xc9   : > { %v839_v49 = vsel %vm835_vm6, %v830_v8, %v748_v9 }
  0xca   : > { %v746_v15 = vpop.permute.xlu0 %745 }
  0xcb   : > { %v837_v5 = vsel %vm835_vm6, %v828_v6, %v746_v15 }
  0xcc   : > { %v846_v53 = vsel %vm844_vm7, %v837_v5, %v760_v13 }
  0xd0   : > { %v774_v41 = vpop.permute.xlu1 %773 }
  0xd1   : > { %v855_v18 = vsel %vm853_vm8, %v846_v53, %v774_v41 }
  0xd2   : > { %v762_v47 = vpop.permute.xlu0 %761 }
  0xd3   : > { %v848_v42 = vsel %vm844_vm7, %v839_v49, %v762_v47 }
  0xd4   : > { %v857_v54 = vsel %vm853_vm8, %v848_v42, %v776_v36 }
  0xd8   : > { %v790_v62 = vpop.permute.xlu1 %789 }
  0xd9   : > { %v866_v20 = vsel %vm862_vm9, %v857_v54, %v790_v62 }
  0xda   : > { %v788_v19 = vpop.permute.xlu0 %787  ;;  %1082 = vmatmul.msk.bf16.vlgmr.msra.gmra.mxu1 %vm883_vm10, %v866_v20 }
  0xdb   : > { %v864_v24 = vsel %vm862_vm9, %v855_v18, %v788_v19 }
  0xdc   : > { %1081 = vmatmul.msk.bf16.vlgmr.msra.gmra.mxu0 %vm883_vm10, %v864_v24 }
 0x13d   : > { %v920_v26 = vpop.f32.mrf.mxu3 }
 0x13e   : > { %v921_v28 = vadd.f32 %v1132_v25, %v920_v26 }
 0x13f   : > { %v915_v12 = vpop.f32.mrf.mxu2 }
 0x140   : > { %v916_v29 = vadd.f32 %v1132_v25, %v915_v12  ;;  %931 = vst.msk [vmem:[%s385_s18 + $0x30] sm:$0xff] %vm795_vm2, %v921_v28 }
 0x142   : > { %929 = vst.msk [vmem:[%s385_s18 + $0x20] sm:$0xff] %vm795_vm2, %v916_v29 }
 0x145   : > { %v922_v11 = vpop.f32.mrf.mxu3 }
 0x146   : > { %v923_v30 = vadd.f32 %v1132_v25, %v922_v11 }
 0x147   : > { %v917_v21 = vpop.f32.mrf.mxu2 }
 0x148   : > { %v918_v31 = vadd.f32 %v1132_v25, %v917_v21  ;;  %932 = vst.msk [vmem:[%s385_s18 + $0x38] sm:$0xff] %vm795_vm2, %v923_v30 }
 0x14a   : > { %930 = vst.msk [vmem:[%s385_s18 + $0x28] sm:$0xff] %vm795_vm2, %v918_v31 }
 0x157   : > { %v910_v32 = vpop.f32.mrf.mxu1 }
 0x158   : > { %v911_v33 = vadd.f32 %v1132_v25, %v910_v32 }
 0x159   : > { %v905_v37 = vpop.f32.mrf.mxu0 }
 0x15a   : > { %v906_v39 = vadd.f32 %v1132_v25, %v905_v37  ;;  %927 = vst.msk [vmem:[%s385_s18 + $0x10] sm:$0xff] %vm795_vm2, %v911_v33 }
 0x15c   : > { %925 = vst.msk [vmem:[%s385_s18] sm:$0xff] %vm795_vm2, %v906_v39 }
 0x15f   : > { %v912_v40 = vpop.f32.mrf.mxu1 }
 0x160   : > { %v913_v45 = vadd.f32 %v1132_v25, %v912_v40 }
 0x161   : > { %v907_v44 = vpop.f32.mrf.mxu0 }
 0x162   : > { %v908_v46 = vadd.f32 %v1132_v25, %v907_v44  ;;  %928 = vst.msk [vmem:[%s385_s18 + $0x18] sm:$0xff] %vm795_vm2, %v913_v45 }
 0x164   : > { %926 = vst.msk [vmem:[%s385_s18 + $0x8] sm:$0xff] %vm795_vm2, %v908_v46 }
 0x165 PF: > { %s16_s23 = sadd.s32 1, %s1155_s23   ;;  %s1559_s21 = smov %s1151_s22 }
 0x166   : > { %p13_p5 = scmp.ge.s32.totalorder %s16_s23, 4   ;;  %s1560_s22 = smov %s1562_s24 }
 0x168   :  { %15 = sbr.rel (!%p13_p5) target bundleno = 2 (0x2), region = 83 }

// kernel: tpu_custom_call.1
= control target key start
LH: loop header
LB: loop body
LE: loop exit
PB: predicated region body
PF: predicated region fallthrough
CT: control target
= control target key end

     0   :  { %s1200_s21 = smov 0   ;;  %s1202_s22 = smov 0   ;;  %s1552_s0 = inlined_call_operand.vmem [shape: f32[2,9,9,4], index: 0, kind: input, shape index: {}]   ;;  %s1553_s1 = inlined_call_operand.vmem [shape: f32[2,9,9,4], index: 1, kind: input, shape index: {}]   ;;  %s1554_s2 = inlined_call_operand.vmem [shape: f32[2,8,9,4], index: 2, kind: input, shape index: {}]   ;;  %s1555_s3 = inlined_call_operand.vmem [shape: f32[2,8,9,4], index: 3, kind: input, shape index: {}]   ;;  %s1556_s4 = inlined_call_operand.vmem [shape: f32[36,4], index: 4, kind: input, shape index: {}]   ;;  %s1557_s5 = inlined_call_operand.vmem [shape: f32[1,4], index: 5, kind: input, shape index: {}]   ;;  %s1558_s6 = inlined_call_operand.vmem [shape: f32[2,8,8,4], index: 6, kind: output, shape index: {}]  }
   0x1   :  { %s1204_s23 = smov 0  }
   0x2 LB: > { %s28_s24 = sadd.s32 1, %s1151_s22  ;;  %p1072_p0 = scmp.ge.s32.totalorder %s1155_s23, 1  ;;  %s1155_s23 = sphi %s1204_s23, %s16_s23   ;;  %s1151_s22 = sphi %s1202_s22, %s1560_s22   ;;  %s1147_s21 = sphi %s1200_s21, %s1559_s21  }
   0x3   : > { %p30_p1 = scmp.ge.s32.totalorder %s28_s24, 2  ;;  %p280_p2 = scmp.lt.s32.totalorder %s1155_s23, 3 }
   0x5   : > { %s1562_s24 = smov (%p30_p1, %s28_s24), 0  ;;  %p281_p3 = pnand %p1072_p0, %p280_p2 }
   0x6   : > { %p342_p4 = scmp.lt.s32.totalorder (!%p281_p3), %s1147_s21, 1  ;;  %s1157_s15 = smov (!%p281_p3), 16  }
   0x7   : > { %284 = sbr.rel (%p281_p3) target bundleno = 357 (0x165), region = 44  ;;  %s1158_s16 = smov (!%p281_p3), 4  }
   0x8   : > { %s1159_s17 = smov (!%p281_p3), 12   ;;  %s1160_s18 = smov (!%p281_p3), 8  }
   0x9   : > { %s1161_s19 = smov (!%p281_p3), 20   ;;  %s1162_s20 = smov (!%p281_p3), 24  }
   0xc   : > { %s1564_s21 = smov (!%p342_p4, %s1147_s21), 1  ;;  %vm471_vm0 = vcmask 1046528   ;;  %vm892_vm1 = vcmask 1041408   ;;  %vm795_vm2 = vcmask 31744   ;;  %vm808_vm3 = vcmask 64512  }
   0xd   : > { %s1087_s25 = sshll.u32 %s1564_s21, 7  ;;  %s1099_s26 = smul.u32 144, %s1564_s21  ;;  %vm817_vm4 = vcmask 97280   ;;  %vm826_vm5 = vcmask 130048   ;;  %vm835_vm6 = vcmask 162816   ;;  %vm844_vm7 = vcmask 195584  }
   0xe   : > { %s1225_s29 = scalar_lea.vmem %s1555_s3, %s1087_s25  ;;  %s1230_s8 = scalar_lea.vmem %s1554_s2, %s1087_s25  ;;  %vm853_vm8 = vcmask 228352   ;;  %vm862_vm9 = vcmask 261120   ;;  %vm883_vm10 = vcmask 293888  }
   0xf   : > { %v437_v0 = vld [vmem:[%s1225_s29 + $0x60] sm:$0xff]  ;;  %v438_v1 = vld [vmem:[%s1225_s29 + $0x70] sm:$0xff]  ;;  %s1237_s11 = scalar_lea.vmem %s1553_s1, %s1099_s26  ;;  %s1242_s14 = scalar_lea.vmem %s1552_s0, %s1099_s26  ;;  %v428_v61 = vld [vmem:[%s1230_s8 + $0x68] sm:$0x1] }
  0x10   : > { %v1245_v2 = vld [vmem:[%s1230_s8 + $0x40] sm:$0xff]  ;;  %v526_v3 = vpack.c.bf16 %v437_v0, %v437_v0  ;;  %v527_v4 = vpack.c.bf16 %v438_v1, %v438_v1  ;;  %v411_v6 = vld [vmem:[%s1237_s11 + $0x50] sm:$0xff]  ;;  %v397_v10 = vld [vmem:[%s1242_s14 + $0x48] sm:$0x1]  ;;  %s1163_s25 = smov 28   ;;  %s1164_s26 = smov 32  }
  0x11   : > { %v410_v5 = vld [vmem:[%s1237_s11 + $0x40] sm:$0xff]  ;;  %v452_v9 = vpack.c.bf16 %v411_v6, %v411_v6  ;;  %v1254_v11 = vld [vmem:[%s1242_s14 + $0x50] sm:$0xff]  ;;  %v399_v12 = vld [vmem:[%s1242_s14 + $0x58] sm:$0x1]  ;;  %v516_v14 = vpack.c.bf16 %v1245_v2, %v1245_v2  ;;  %v485_v17 = vrot.slane %v397_v10, 1  ;;  %v556_v63 = vrot.slane %v1245_v2, 1 }
  0x12   : > { %v1250_v7 = vld [vmem:[%s1242_s14 + $0x40] sm:$0xff]  ;;  %v451_v8 = vpack.c.bf16 %v410_v5, %v410_v5  ;;  %v711_v15 = vunpack.c.l.b16 %v526_v3  ;;  %v712_v16 = vunpack.c.l.b16 %v527_v4  ;;  %v487_v18 = vrot.slane %v1254_v11, 1  ;;  %v413_v20 = vld [vmem:[%s1237_s11 + $0x70] sm:$0xff]  ;;  %v401_v26 = vld [vmem:[%s1242_s14 + $0x68] sm:$0x1]  ;;  %s1089_s13 = sshll.u32 %s1564_s21, 6 }
  0x13   : > { %v484_v13 = vrot.slane %v1250_v7, 1  ;;  %v412_v19 = vld [vmem:[%s1237_s11 + $0x60] sm:$0xff]  ;;  %v1268_v23 = vunpack.c.l.b16 %v452_v9  ;;  %v488_v24 = vrot.slane %v399_v12, 1  ;;  %v1272_v27 = vld [vmem:[%s1242_s14 + $0x70] sm:$0xff]  ;;  %v454_v30 = vpack.c.bf16 %v413_v20, %v413_v20  ;;  %v403_v31 = vld [vmem:[%s1242_s14 + $0x78] sm:$0x1] }
  0x14   : > { %v1264_v21 = vld [vmem:[%s1242_s14 + $0x60] sm:$0xff]  ;;  %v1266_v22 = vunpack.c.l.b16 %v451_v8  ;;  %v453_v25 = vpack.c.bf16 %v412_v19, %v412_v19  ;;  %v716_v28 = vpack.c.b16 %v712_v16, %v711_v15  ;;  %v1278_v33 = vld [vmem:[%s1230_s8 + $0x50] sm:$0xff]  ;;  %v491_v39 = vrot.slane %v401_v26, 1  ;;  %v430_v3 = vld [vmem:[%s1230_s8 + $0x78] sm:$0x1] }
  0x15   : > { %v486_v29 = vsel %vm471_vm0, %v484_v13, %v485_v17  ;;  %v490_v32 = vrot.slane %v1264_v21, 1  ;;  %v489_v35 = vsel %vm471_vm0, %v487_v18, %v488_v24  ;;  %v493_v40 = vrot.slane %v1272_v27, 1  ;;  %v435_v41 = vld [vmem:[%s1225_s29 + $0x40] sm:$0xff]  ;;  %v436_v46 = vld [vmem:[%s1225_s29 + $0x50] sm:$0xff]  ;;  %v424_v9 = vld [vmem:[%s1230_s8 + $0x48] sm:$0x1] }
  0x16   : > { %v631_v34 = vpack.c.b16 %v1268_v23, %v1266_v22  ;;  %v508_v36 = vpack.c.bf16 %v486_v29, %v486_v29  ;;  %723 = vrot.lane.b32.xlu1 %v716_v28, %s1157_s15  ;;  %v509_v37 = vpack.c.bf16 %v489_v35, %v489_v35  ;;  %v1284_v38 = vunpack.c.l.b16 %v453_v25  ;;  %v427_v57 = vld [vmem:[%s1230_s8 + $0x60] sm:$0xff]  ;;  %v429_v58 = vld [vmem:[%s1230_s8 + $0x70] sm:$0xff]  ;;  %v426_v10 = vld [vmem:[%s1230_s8 + $0x58] sm:$0x1] }
  0x17   : > { %v1291_v43 = vunpack.c.l.b16 %v454_v30  ;;  %v494_v44 = vrot.slane %v403_v31, 1  ;;  %v517_v45 = vpack.c.bf16 %v1278_v33, %v1278_v33  ;;  %v492_v48 = vsel %vm471_vm0, %v490_v32, %v491_v39 }
  0x18   : > { %637 = vrot.lane.b32.xlu0 %v631_v34, %s1158_s16  ;;  %v1289_v42 = vunpack.c.l.b16 %v508_v36  ;;  %v1296_v47 = vunpack.c.l.b16 %v509_v37  ;;  %v681_v49 = vunpack.c.l.b16 %v516_v14  ;;  %v510_v51 = vpack.c.bf16 %v492_v48, %v492_v48  ;;  %v408_v36 = vld [vmem:[%s1237_s11 + $0x20] sm:$0xff]  ;;  %v389_v48 = vld [vmem:[%s1242_s14 + $0x8] sm:$0x1] }
  0x19   : > { %v495_v50 = vsel %vm471_vm0, %v493_v40, %v494_v44  ;;  %v682_v52 = vunpack.c.l.b16 %v517_v45  ;;  %v524_v53 = vpack.c.bf16 %v435_v41, %v435_v41  ;;  %v525_v56 = vpack.c.bf16 %v436_v46, %v436_v46  ;;  %v409_v40 = vld [vmem:[%s1237_s11 + $0x30] sm:$0xff]  ;;  %v1338_v41 = vld [vmem:[%s1242_s14] sm:$0xff] }
  0x1a   : > { %v659_v54 = vpack.c.b16 %v1296_v47, %v1289_v42  ;;  %v511_v55 = vpack.c.bf16 %v495_v50, %v495_v50  ;;  %v632_v59 = vpack.c.b16 %v1291_v43, %v1284_v38  ;;  %v1307_v62 = vunpack.c.l.b16 %v510_v51  ;;  %v1341_v44 = vld [vmem:[%s1242_s14 + $0x80] sm:$0xff]  ;;  %v391_v50 = vld [vmem:[%s1242_s14 + $0x18] sm:$0x1] }
  0x1b   : > { %v687_v60 = vpack.c.b16 %v682_v52, %v681_v49  ;;  %v559_v0 = vrot.slane %v1278_v33, 1  ;;  %v518_v1 = vpack.c.bf16 %v427_v57, %v427_v57  ;;  %v709_v4 = vunpack.c.l.b16 %v524_v53  ;;  %v1346_v49 = vld [vmem:[%s1242_s14 + $0x10] sm:$0xff]  ;;  %v406_v53 = vld [vmem:[%s1237_s11] sm:$0xff] }
  0x1c   : > { %v519_v5 = vpack.c.bf16 %v429_v58, %v429_v58  ;;  %v562_v6 = vrot.slane %v427_v57, 1  ;;  %v565_v8 = vrot.slane %v429_v58, 1  ;;  %v1316_v12 = vunpack.c.l.b16 %v511_v55 }
  0x1d   : > { %693 = vrot.lane.b32.xlu2 %v687_v60, %s1159_s17  ;;  %v710_v13 = vunpack.c.l.b16 %v525_v56  ;;  %v683_v2 = vunpack.c.l.b16 %v518_v1  ;;  %v563_v14 = vrot.slane %v428_v61, 1  ;;  %v444_v15 = vpack.c.bf16 %v1254_v11, %v1254_v11 }
  0x1e   : > { %665 = vrot.lane.b32.xlu1 %v659_v54, %s1160_s18  ;;  %v684_v16 = vunpack.c.l.b16 %v519_v5  ;;  %v566_v17 = vrot.slane %v430_v3, 1  ;;  %v445_v18 = vpack.c.bf16 %v1264_v21, %v1264_v21  ;;  %v557_v20 = vrot.slane %v424_v9, 1  ;;  %v407_v54 = vld [vmem:[%s1237_s11 + $0x10] sm:$0xff] }
  0x1f   : > { %v564_v19 = vsel %vm471_vm0, %v562_v6, %v563_v14  ;;  %v560_v24 = vrot.slane %v426_v10, 1  ;;  %v660_v28 = vpack.c.b16 %v1316_v12, %v1307_v62  ;;  %v715_v29 = vpack.c.b16 %v710_v13, %v709_v4  ;;  %v1370_v10 = vld [vmem:[%s1242_s14 + $0x20] sm:$0xff]  ;;  %v393_v14 = vld [vmem:[%s1242_s14 + $0x28] sm:$0x1] }
  0x20   : > { %639 = vrot.lane.b32.xlu0 %v632_v59, %s1158_s16  ;;  %v688_v25 = vpack.c.b16 %v684_v16, %v683_v2  ;;  %v567_v26 = vsel %vm471_vm0, %v565_v8, %v566_v17  ;;  %v558_v11 = vsel %vm471_vm0, %v556_v63, %v557_v20  ;;  %v582_v21 = vpack.c.bf16 %v564_v19, %v564_v19  ;;  %v395_v16 = vld [vmem:[%s1242_s14 + $0x38] sm:$0x1]  ;;  %v414_v17 = vld [vmem:[%s1237_s11 + $0x80] sm:$0xff] }
  0x21   : > { %v561_v30 = vsel %vm471_vm0, %v559_v0, %v560_v24  ;;  %v583_v31 = vpack.c.bf16 %v567_v26, %v567_v26  ;;  %v580_v32 = vpack.c.bf16 %v558_v11, %v558_v11  ;;  %v1329_v34 = vunpack.c.l.b16 %v444_v15  ;;  %v1377_v15 = vld [vmem:[%s1242_s14 + $0x30] sm:$0xff] }
  0x22   : > { %v581_v33 = vpack.c.bf16 %v561_v30, %v561_v30  ;;  %v1331_v35 = vunpack.c.l.b16 %v445_v18  ;;  %v739_v45 = vunpack.c.l.b16 %v582_v21  ;;  %v449_v52 = vpack.c.bf16 %v408_v36, %v408_v36  ;;  %v405_v18 = vld [vmem:[%s1242_s14 + $0x88] sm:$0x1] }
  0x23   : > { %v737_v37 = vunpack.c.l.b16 %v580_v32  ;;  %v740_v46 = vunpack.c.l.b16 %v583_v31  ;;  %v450_v55 = vpack.c.bf16 %v409_v40, %v409_v40  ;;  %v446_v57 = vpack.c.bf16 %v1272_v27, %v1272_v27 }
  0x24   : > { %v738_v39 = vunpack.c.l.b16 %v581_v33  ;;  %v757_v51 = vpack.c.b16 %v1331_v35, %v1329_v34  ;;  %v584_v58 = vpack.c.bf16 %v1341_v44, %v1341_v44  ;;  %v472_v59 = vrot.slane %v1338_v41, 1 }
  0x25   : > { %695 = vrot.lane.b32.xlu2 %v688_v25, %s1159_s17  ;;  %v473_v60 = vrot.slane %v389_v48, 1  ;;  %v475_v61 = vrot.slane %v1346_v49, 1  ;;  %v476_v63 = vrot.slane %v391_v50, 1  ;;  %v744_v0 = vpack.c.b16 %v740_v46, %v739_v45 }
  0x26   : > { %667 = vrot.lane.b32.xlu1 %v660_v28, %s1160_s18  ;;  %v743_v56 = vpack.c.b16 %v738_v39, %v737_v37  ;;  %v447_v1 = vpack.c.bf16 %v406_v53, %v406_v53  ;;  %v448_v3 = vpack.c.bf16 %v407_v54, %v407_v54  ;;  %v1359_v4 = vunpack.c.l.b16 %v449_v52 }
  0x27   : > { %v1361_v5 = vunpack.c.l.b16 %v450_v55  ;;  %v1364_v27 = vunpack.c.l.b16 %v446_v57  ;;  %v754_v6 = vunpack.c.l.b16 %v584_v58  ;;  %v474_v8 = vsel %vm471_vm0, %v472_v59, %v473_v60  ;;  %v432_v55 = vld [vmem:[%s1225_s29 + $0x10] sm:$0xff]  ;;  %v422_v59 = vld [vmem:[%s1230_s8 + $0x38] sm:$0x1]  ;;  %v415_v60 = vld [vmem:[%s1230_s8] sm:$0xff] }
  0x28   : > { %721 = vrot.lane.b32.xlu0 %v715_v29, %s1157_s15  ;;  %v477_v9 = vsel %vm471_vm0, %v475_v61, %v476_v63  ;;  %v621_v13 = vunpack.c.l.b16 %v447_v1  ;;  %v1373_v2 = vunpack.c.l.b16 %v448_v3  ;;  %v504_v20 = vpack.c.bf16 %v474_v8, %v474_v8  ;;  %v421_v57 = vld [vmem:[%s1230_s8 + $0x30] sm:$0xff]  ;;  %v416_v1 = vld [vmem:[%s1230_s8 + $0x8] sm:$0x1]  ;;  %v418_v3 = vld [vmem:[%s1230_s8 + $0x18] sm:$0x1] }
  0x29   : > { %v630_v19 = vpack.c.b16 %v1361_v5, %v1359_v4  ;;  %v505_v24 = vpack.c.bf16 %v477_v9, %v477_v9  ;;  %v758_v25 = vpack.c.b16 %v754_v6, %v1364_v27  ;;  %v478_v26 = vrot.slane %v1370_v10, 1  ;;  %v417_v61 = vld [vmem:[%s1230_s8 + $0x10] sm:$0xff] }
  0x2a   : > { %v479_v28 = vrot.slane %v393_v14, 1  ;;  %v481_v29 = vrot.slane %v1377_v15, 1  ;;  %v482_v11 = vrot.slane %v395_v16, 1  ;;  %v629_v30 = vpack.c.b16 %v1373_v2, %v621_v13 }
  0x2b   : > { %v585_v21 = vpack.c.bf16 %v414_v17, %v414_v17  ;;  %v588_v31 = vrot.slane %v1341_v44, 1  ;;  %v589_v32 = vrot.slane %v405_v18, 1  ;;  %v649_v33 = vunpack.c.l.b16 %v504_v20 }
  0x2c   : > { %v1391_v36 = vunpack.c.l.b16 %v505_v24  ;;  %v480_v37 = vsel %vm471_vm0, %v478_v26, %v479_v28  ;;  %v483_v39 = vsel %vm471_vm0, %v481_v29, %v482_v11  ;;  %v771_v44 = vpack.c.b16 %v1284_v38, %v1268_v23  ;;  %v431_v38 = vld [vmem:[%s1225_s29] sm:$0xff] }
  0x2d   : > { %749 = vrot.lane.b32.xlu2 %v743_v56, %s1161_s19  ;;  %v768_v40 = vunpack.c.l.b16 %v585_v21  ;;  %v590_v45 = vsel %vm471_vm0, %v588_v31, %v589_v32  ;;  %v506_v46 = vpack.c.bf16 %v480_v37, %v480_v37  ;;  %v507_v48 = vpack.c.bf16 %v483_v39, %v483_v39  ;;  %v419_v56 = vld [vmem:[%s1230_s8 + $0x20] sm:$0xff] }
  0x2e   : > { %763 = vrot.lane.b32.xlu1 %v757_v51, %s1162_s20  ;;  %v657_v50 = vpack.c.b16 %v1391_v36, %v649_v33  ;;  %v592_v51 = vpack.c.bf16 %v590_v45, %v590_v45  ;;  %v785_v58 = vpack.c.b16 %v1307_v62, %v1296_v47  ;;  %v520_v63 = vpack.c.bf16 %v431_v38, %v431_v38  ;;  %v433_v11 = vld [vmem:[%s1225_s29 + $0x20] sm:$0xff] }
  0x2f   : > { %v772_v52 = vpack.c.b16 %v768_v40, %v1291_v43  ;;  %v1402_v53 = vunpack.c.l.b16 %v506_v46  ;;  %v1404_v54 = vunpack.c.l.b16 %v507_v48  ;;  %v420_v43 = vld [vmem:[%s1230_s8 + $0x28] sm:$0x1]  ;;  %v512_v6 = vpack.c.bf16 %v415_v60, %v415_v60 }
  0x30   : > { %751 = vrot.lane.b32.xlu0 %v744_v0, %s1161_s19  ;;  %v782_v23 = vunpack.c.l.b16 %v592_v51  ;;  %v513_v8 = vpack.c.bf16 %v417_v61, %v417_v61  ;;  %v521_v13 = vpack.c.bf16 %v432_v55, %v432_v55  ;;  %v514_v14 = vpack.c.bf16 %v419_v56, %v419_v56 }
  0x31   : > { %v658_v0 = vpack.c.b16 %v1404_v54, %v1402_v53  ;;  %v515_v16 = vpack.c.bf16 %v421_v57, %v421_v57  ;;  %v550_v17 = vrot.slane %v419_v56, 1  ;;  %v553_v47 = vrot.slane %v421_v57, 1 }
  0x32   : > { %v786_v9 = vpack.c.b16 %v782_v23, %v1316_v12  ;;  %v551_v62 = vrot.slane %v420_v43, 1  ;;  %v554_v18 = vrot.slane %v422_v59, 1  ;;  %v545_v20 = vrot.slane %v416_v1, 1 }
  0x33   : > { %v547_v24 = vrot.slane %v417_v61, 1  ;;  %v677_v26 = vunpack.c.l.b16 %v512_v6  ;;  %v678_v28 = vunpack.c.l.b16 %v513_v8  ;;  %v705_v12 = vunpack.c.l.b16 %v520_v63 }
  0x34   : > { %v706_v29 = vunpack.c.l.b16 %v521_v13  ;;  %v679_v21 = vunpack.c.l.b16 %v514_v14  ;;  %v680_v31 = vunpack.c.l.b16 %v515_v16  ;;  %v552_v32 = vsel %vm471_vm0, %v550_v17, %v551_v62 }
  0x35   : > { %765 = vrot.lane.b32.xlu2 %v758_v25, %s1162_s20  ;;  %v548_v25 = vrot.slane %v418_v3, 1  ;;  %v555_v33 = vsel %vm471_vm0, %v553_v47, %v554_v18  ;;  %v685_v40 = vpack.c.b16 %v678_v28, %v677_v26  ;;  %v522_v45 = vpack.c.bf16 %v433_v11, %v433_v11 }
  0x36   : > { %635 = vrot.lane.b32.xlu1 %v630_v19, %s1158_s16  ;;  %v544_v19 = vrot.slane %v415_v60, 1  ;;  %v713_v46 = vpack.c.b16 %v706_v29, %v705_v12  ;;  %v578_v48 = vpack.c.bf16 %v552_v32, %v552_v32  ;;  %v686_v51 = vpack.c.b16 %v680_v31, %v679_v21 }
  0x37   : > { %v549_v39 = vsel %vm471_vm0, %v547_v24, %v548_v25  ;;  %v707_v38 = vunpack.c.l.b16 %v522_v45  ;;  %v440_v60 = vpack.c.bf16 %v1346_v49, %v1346_v49  ;;  %v441_v61 = vpack.c.bf16 %v1370_v10, %v1370_v10  ;;  %v872_v24 = vld [vmem:[%s1556_s4 + $0x8] sm:$0xff] }
  0x38   : > { %633 = vrot.lane.b32.xlu0 %v629_v30, %s1158_s16  ;;  %v434_v30 = vld [vmem:[%s1225_s29 + $0x30] sm:$0xff]  ;;  %v546_v37 = vsel %vm471_vm0, %v544_v19, %v545_v20  ;;  %v577_v23 = vpack.c.bf16 %v549_v39, %v549_v39  ;;  %v735_v56 = vunpack.c.l.b16 %v578_v48  ;;  %v442_v1 = vpack.c.bf16 %v1377_v15, %v1377_v15  ;;  %v871_v20 = vld [vmem:[%s1556_s4] sm:$0xff] }
  0x39   : > { %v443_v3 = vpack.c.bf16 %v1250_v7, %v1250_v7  ;;  %v1444_v6 = vunpack.c.l.b16 %v440_v60  ;;  %v1446_v8 = vunpack.c.l.b16 %v441_v61  ;;  %v769_v15 = vpack.c.b16 %v1359_v4, %v1373_v2 }
  0x3a   : > { %v1450_v49 = vunpack.c.l.b16 %v442_v1  ;;  %v770_v13 = vpack.c.b16 %v1266_v22, %v1361_v5  ;;  %v784_v14 = vpack.c.b16 %v1289_v42, %v1404_v54  ;;  %v783_v16 = vpack.c.b16 %v1402_v53, %v1391_v36  ;;  %v875_v22 = vld [vmem:[%s1556_s4 + $0x20] sm:$0xf]  ;;  %v873_v53 = vld [vmem:[%s1556_s4 + $0x10] sm:$0xff]  ;;  %v874_v54 = vld [vmem:[%s1556_s4 + $0x18] sm:$0xff] }
  0x3b   : > { %v605_v10 = vunpack.c.l.b16 %v443_v3  ;;  %v878_v5 = vpack.c.bf16 %v875_v22, %v875_v22  ;;  %v877_v19 = vpack.c.bf16 %v874_v54, %v873_v53  ;;  %v876_v25 = vpack.c.bf16 %v872_v24, %v871_v20 }
  0x3c   : > { %v612_v21 = vpack.c.b16 %v1364_v27, %v1331_v35  ;;  %v439_v1 = vpack.c.bf16 %v1338_v41, %v1338_v41 }
  0x3d   : > { %777 = vrot.lane.b32.xlu2 %v771_v44, %s1163_s25  ;;  %v523_v44 = vpack.c.bf16 %v434_v30, %v434_v30  ;;  %v756_v7 = vpack.c.b16 %v605_v10, %v1450_v49  ;;  %v894_v42 = vsel %vm892_vm1, %v878_v5, 0  ;;  %v611_v32 = vpack.c.b16 %v1329_v34, %v605_v10 }
  0x3e   : > { %661 = vrot.lane.b32.xlu1 %v657_v50, %s1160_s18  ;;  %v579_v50 = vpack.c.bf16 %v555_v33, %v555_v33  ;;  %1092 = vmatpush.bf16.msra.mxu3 %v894_v42  ;;  %v601_v3 = vunpack.c.l.b16 %v439_v1  ;;  %v610_v10 = vpack.c.b16 %v1450_v49, %v1446_v8 }
  0x3f   : > { %v708_v55 = vunpack.c.l.b16 %v523_v44  ;;  %1091 = vmatpush.bf16.msra.mxu2 %v894_v42  ;;  %1090 = vmatpush.bf16.msra.mxu1 %v894_v42 }
  0x40   : > { %779 = vrot.lane.b32.xlu0 %v772_v52, %s1163_s25  ;;  %v576_v52 = vpack.c.bf16 %v546_v37, %v546_v37  ;;  %v736_v57 = vunpack.c.l.b16 %v579_v50  ;;  %901 = vmatpush.bf16.msra.mxu0 %v894_v42 }
  0x41   : > { %v714_v59 = vpack.c.b16 %v708_v55, %v707_v38 }
  0x42   : > { %v733_v43 = vunpack.c.l.b16 %v576_v52  ;;  %v742_v63 = vpack.c.b16 %v736_v57, %v735_v56  ;;  %1095 = vmatpush.bf16.msra.mxu3 %v877_v19 }
  0x43   : > { %1094 = vmatpush.bf16.msra.mxu2 %v877_v19  ;;  %1093 = vmatpush.bf16.msra.mxu1 %v877_v19 }
  0x44   : > { %902 = vmatpush.bf16.msra.mxu0 %v877_v19 }
  0x45   : > { %663 = vrot.lane.b32.xlu2 %v658_v0, %s1160_s18  ;;  %s385_s18 = scalar_lea.vmem %s1558_s6, %s1089_s13 }
  0x46   : > { %793 = vrot.lane.b32.xlu1 %v786_v9, %s1164_s26  ;;  %v755_v9 = vpack.c.b16 %v1446_v8, %v1444_v6  ;;  %1098 = vmatpush.bf16.msra.mxu3 %v876_v25 }
  0x47   : > { %1097 = vmatpush.bf16.msra.mxu2 %v876_v25  ;;  %1096 = vmatpush.bf16.msra.mxu1 %v876_v25 }
  0x48   : > { %791 = vrot.lane.b32.xlu0 %v785_v58, %s1164_s26  ;;  %v734_v58 = vunpack.c.l.b16 %v577_v23  ;;  %903 = vmatpush.bf16.msra.mxu0 %v876_v25  ;;  %v1132_v25 = vld [vmem:[%s1557_s5] ss:$0 sm:$0xff] }
  0x4a   : > { %v741_v0 = vpack.c.b16 %v734_v58, %v733_v43 }
  0x4d   : > { %689 = vrot.lane.b32.xlu2 %v685_v40, %s1159_s17 }
  0x4e   : > { %717 = vrot.lane.b32.xlu1 %v713_v46, %s1157_s15 }
  0x50   : > { %691 = vrot.lane.b32.xlu0 %v686_v51, %s1159_s17 }
  0x55   : > { %719 = vrot.lane.b32.xlu2 %v714_v59, %s1157_s15 }
  0x56   : > { %747 = vrot.lane.b32.xlu1 %v742_v63, %s1161_s19 }
  0x58   : > { %745 = vrot.lane.b32.xlu0 %v741_v0, %s1161_s19 }
  0x5d   : > { %759 = vrot.lane.b32.xlu2 %v755_v9, %s1162_s20 }
  0x5e   : > { %773 = vrot.lane.b32.xlu1 %v769_v15, %s1163_s25 }
  0x60   : > { %761 = vrot.lane.b32.xlu0 %v756_v7, %s1162_s20  ;;  %v609_v7 = vpack.c.b16 %v1444_v6, %v601_v3 }
  0x65   : > { %775 = vrot.lane.b32.xlu2 %v770_v13, %s1163_s25 }
  0x66   : > { %789 = vrot.lane.b32.xlu1 %v784_v14, %s1164_s26 }
  0x68   : > { %787 = vrot.lane.b32.xlu0 %v783_v16, %s1164_s26 }
  0x77   : > { %v694_v4 = vpop.permute.xlu2 %693 }
  0x7f   : > { %v696_v2 = vpop.permute.xlu2 %695 }
  0x87   : > { %v750_v62 = vpop.permute.xlu2 %749 }
  0x88   : > { %v724_v17 = vpop.permute.xlu1 %723 }
  0x8a   : > { %v638_v47 = vpop.permute.xlu0 %637 }
  0x8b   : > { %v804_v39 = vsel %vm795_vm2, %v611_v32, %v638_v47 }
  0x8f   : > { %v766_v12 = vpop.permute.xlu2 %765 }
  0x90   : > { %v666_v36 = vpop.permute.xlu1 %665 }
  0x91   : > { %v814_v45 = vsel %vm808_vm3, %v804_v39, %v666_v36 }
  0x92   : > { %v640_v18 = vpop.permute.xlu0 %639  ;;  %v823_v27 = vsel %vm817_vm4, %v814_v45, %v694_v4 }
  0x93   : > { %v807_v37 = vsel %vm795_vm2, %v612_v21, %v640_v18 }
  0x97   : > { %v778_v30 = vpop.permute.xlu2 %777 }
  0x98   : > { %v668_v26 = vpop.permute.xlu1 %667 }
  0x99   : > { %v816_v40 = vsel %vm808_vm3, %v807_v37, %v668_v26 }
  0x9a   : > { %v722_v28 = vpop.permute.xlu0 %721  ;;  %v825_v46 = vsel %vm817_vm4, %v816_v40, %v696_v2 }
  0x9b   : > { %v832_v48 = vsel %vm826_vm5, %v823_v27, %v722_v28  ;;  %v834_v50 = vsel %vm826_vm5, %v825_v46, %v724_v17 }
  0x9c   : > { %v841_v52 = vsel %vm835_vm6, %v832_v48, %v750_v62 }
  0x9f   : > { %v664_v44 = vpop.permute.xlu2 %663 }
  0xa0   : > { %v764_v29 = vpop.permute.xlu1 %763 }
  0xa1   : > { %v850_v23 = vsel %vm844_vm7, %v841_v52, %v764_v29 }
  0xa2   : > { %v752_v11 = vpop.permute.xlu0 %751  ;;  %v859_v57 = vsel %vm853_vm8, %v850_v23, %v778_v30 }
  0xa3   : > { %v843_v51 = vsel %vm835_vm6, %v834_v50, %v752_v11 }
  0xa4   : > { %v852_v38 = vsel %vm844_vm7, %v843_v51, %v766_v12 }
  0xa7   : > { %v690_v43 = vpop.permute.xlu2 %689 }
  0xa8   : > { %v636_v31 = vpop.permute.xlu1 %635 }
  0xa9   : > { %v801_v14 = vsel %vm795_vm2, %v610_v10, %v636_v31 }
  0xaa   : > { %v634_v33 = vpop.permute.xlu0 %633  ;;  %v812_v4 = vsel %vm808_vm3, %v801_v14, %v664_v44 }
  0xab   : > { %v798_v16 = vsel %vm795_vm2, %v609_v7, %v634_v33 }
  0xaf   : > { %v720_v0 = vpop.permute.xlu2 %719 }
  0xb0   : > { %v662_v35 = vpop.permute.xlu1 %661 }
  0xb1   : > { %v810_v2 = vsel %vm808_vm3, %v798_v16, %v662_v35 }
  0xb2   : > { %v780_v34 = vpop.permute.xlu0 %779  ;;  %v819_v22 = vsel %vm817_vm4, %v810_v2, %v690_v43 }
  0xb3   : > { %v861_v55 = vsel %vm853_vm8, %v852_v38, %v780_v34 }
  0xb7   : > { %v760_v13 = vpop.permute.xlu2 %759 }
  0xb8   : > { %v794_v56 = vpop.permute.xlu1 %793 }
  0xb9   : > { %v870_v59 = vsel %vm862_vm9, %v861_v55, %v794_v56 }
  0xba   : > { %v792_v58 = vpop.permute.xlu0 %791  ;;  %1084 = vmatmul.msk.bf16.vlgmr.msra.gmra.mxu3 %vm883_vm10, %v870_v59 }
  0xbb   : > { %v868_v60 = vsel %vm862_vm9, %v859_v57, %v792_v58 }
  0xbc   : > { %1083 = vmatmul.msk.bf16.vlgmr.msra.gmra.mxu2 %vm883_vm10, %v868_v60 }
  0xbf   : > { %v776_v36 = vpop.permute.xlu2 %775 }
  0xc0   : > { %v718_v61 = vpop.permute.xlu1 %717 }
  0xc1   : > { %v828_v6 = vsel %vm826_vm5, %v819_v22, %v718_v61 }
  0xc2   : > { %v692_v63 = vpop.permute.xlu0 %691 }
  0xc3   : > { %v821_v17 = vsel %vm817_vm4, %v812_v4, %v692_v63 }
  0xc4   : > { %v830_v8 = vsel %vm826_vm5, %v821_v17, %v720_v0 }
  0xc8   : > { %v748_v9 = vpop.permute.xlu1 %747 }
  0xc9   : > { %v839_v49 = vsel %vm835_vm6, %v830_v8, %v748_v9 }
  0xca   : > { %v746_v15 = vpop.permute.xlu0 %745 }
  0xcb   : > { %v837_v5 = vsel %vm835_vm6, %v828_v6, %v746_v15 }
  0xcc   : > { %v846_v53 = vsel %vm844_vm7, %v837_v5, %v760_v13 }
  0xd0   : > { %v774_v41 = vpop.permute.xlu1 %773 }
  0xd1   : > { %v855_v18 = vsel %vm853_vm8, %v846_v53, %v774_v41 }
  0xd2   : > { %v762_v47 = vpop.permute.xlu0 %761 }
  0xd3   : > { %v848_v42 = vsel %vm844_vm7, %v839_v49, %v762_v47 }
  0xd4   : > { %v857_v54 = vsel %vm853_vm8, %v848_v42, %v776_v36 }
  0xd8   : > { %v790_v62 = vpop.permute.xlu1 %789 }
  0xd9   : > { %v866_v20 = vsel %vm862_vm9, %v857_v54, %v790_v62 }
  0xda   : > { %v788_v19 = vpop.permute.xlu0 %787  ;;  %1082 = vmatmul.msk.bf16.vlgmr.msra.gmra.mxu1 %vm883_vm10, %v866_v20 }
  0xdb   : > { %v864_v24 = vsel %vm862_vm9, %v855_v18, %v788_v19 }
  0xdc   : > { %1081 = vmatmul.msk.bf16.vlgmr.msra.gmra.mxu0 %vm883_vm10, %v864_v24 }
 0x13d   : > { %v920_v26 = vpop.f32.mrf.mxu3 }
 0x13e   : > { %v921_v28 = vadd.f32 %v1132_v25, %v920_v26 }
 0x13f   : > { %v915_v12 = vpop.f32.mrf.mxu2 }
 0x140   : > { %v916_v29 = vadd.f32 %v1132_v25, %v915_v12  ;;  %931 = vst.msk [vmem:[%s385_s18 + $0x30] sm:$0xff] %vm795_vm2, %v921_v28 }
 0x142   : > { %929 = vst.msk [vmem:[%s385_s18 + $0x20] sm:$0xff] %vm795_vm2, %v916_v29 }
 0x145   : > { %v922_v11 = vpop.f32.mrf.mxu3 }
 0x146   : > { %v923_v30 = vadd.f32 %v1132_v25, %v922_v11 }
 0x147   : > { %v917_v21 = vpop.f32.mrf.mxu2 }
 0x148   : > { %v918_v31 = vadd.f32 %v1132_v25, %v917_v21  ;;  %932 = vst.msk [vmem:[%s385_s18 + $0x38] sm:$0xff] %vm795_vm2, %v923_v30 }
 0x14a   : > { %930 = vst.msk [vmem:[%s385_s18 + $0x28] sm:$0xff] %vm795_vm2, %v918_v31 }
 0x157   : > { %v910_v32 = vpop.f32.mrf.mxu1 }
 0x158   : > { %v911_v33 = vadd.f32 %v1132_v25, %v910_v32 }
 0x159   : > { %v905_v37 = vpop.f32.mrf.mxu0 }
 0x15a   : > { %v906_v39 = vadd.f32 %v1132_v25, %v905_v37  ;;  %927 = vst.msk [vmem:[%s385_s18 + $0x10] sm:$0xff] %vm795_vm2, %v911_v33 }
 0x15c   : > { %925 = vst.msk [vmem:[%s385_s18] sm:$0xff] %vm795_vm2, %v906_v39 }
 0x15f   : > { %v912_v40 = vpop.f32.mrf.mxu1 }
 0x160   : > { %v913_v45 = vadd.f32 %v1132_v25, %v912_v40 }
 0x161   : > { %v907_v44 = vpop.f32.mrf.mxu0 }
 0x162   : > { %v908_v46 = vadd.f32 %v1132_v25, %v907_v44  ;;  %928 = vst.msk [vmem:[%s385_s18 + $0x18] sm:$0xff] %vm795_vm2, %v913_v45 }
 0x164   : > { %926 = vst.msk [vmem:[%s385_s18 + $0x8] sm:$0xff] %vm795_vm2, %v908_v46 }
 0x165 PF: > { %s16_s23 = sadd.s32 1, %s1155_s23   ;;  %s1559_s21 = smov %s1151_s22 }
 0x166   : > { %p13_p5 = scmp.ge.s32.totalorder %s16_s23, 4   ;;  %s1560_s22 = smov %s1562_s24 }
 0x168   :  { %15 = sbr.rel (!%p13_p5) target bundleno = 2 (0x2), region = 83 }

</bundles_post_ra>
